<compile_context>
chip_gen: v7x
topology: tpu7x:2x2x1
jax: 0.10.0
libtpu: 0.0.40
codegen_flags: <defaults>
</compile_context>

<pallas_src>
import jax
import jax.numpy as jnp
from jax.experimental import pallas as pl
from jax.experimental.pallas import tpu as pltpu


def mlp_kernel(x_ref, w_ref, b_ref, o_ref):
    # x_ref: (tile_n, C, H*W)  -- raw NCHW view, spatial on the lane axis
    # w_ref: (C, K)   fused weight (GAP scale folded in), VMEM-resident
    # b_ref: (1, K)   fused bias
    # o_ref: (tile_n, K)
    # Spatial sum with f32 accumulation; upcast fuses into the reduction
    # (no full-tile f32 temp in VMEM).
    pooled = jnp.sum(x_ref[...], axis=-1, dtype=jnp.float32)         # (tile_n, C)

    # Single fused Linear on the MXU, f32 accumulation.
    y = jnp.dot(pooled.astype(w_ref.dtype), w_ref[...],
                preferred_element_type=jnp.float32)                  # (tile_n, K)
    y = y + b_ref[...].astype(jnp.float32)

    o_ref[...] = y.astype(o_ref.dtype)


def fuse_mlp_params(w1, b1, w2, b2, hw):
    """Fuse f1 and f2 into one (C, K) weight + (1, K) bias.

    Valid because the module has no nonlinearity/dropout between f1 and f2.
    Computed with f32 accumulation, then cast to the weight dtype; the GAP
    1/(H*W) scale is folded into the fused weight.  Compute once and cache.
    """
    w_fused = jnp.dot(w1.T, w2.T, preferred_element_type=jnp.float32)   # (C, K)
    w_fused = (w_fused * (1.0 / float(hw))).astype(w1.dtype)
    b_fused = (jnp.dot(b1.astype(jnp.float32), w2.T.astype(jnp.float32))
               + b2.astype(jnp.float32)).reshape(1, -1)                 # (1, K) f32
    return w_fused, b_fused


def _vmem_capacity_bytes():
    try:
        cap = getattr(pltpu.get_tpu_info(), "vmem_capacity_bytes", None)
        if cap:
            return int(cap)
    except Exception:
        pass
    return 64 * 1024 * 1024   # conservative fallback (v7x per-TC physical VMEM)


def mlp_forward_fused(x_nchw, w_fused, b_fused):
    """x_nchw: (N, C, H, W); w_fused: (C, K); b_fused: (1, K)."""
    N, C, H, W = x_nchw.shape
    K = w_fused.shape[1]
    HW = H * W

    # Free view, no HBM relayout: spatial is already the fastest axis in NCHW.
    x_view = x_nchw.reshape(N, C, HW)

    itemsize = jnp.dtype(x_view.dtype).itemsize
    bytes_per_row = C * HW * itemsize

    # Generation-aware per-x-buffer budget (~capacity/12: ~10 MiB on v5e/v6e
    # with 128 MiB VMEM, ~5 MiB on v7x with 64 MiB per TC).
    vmem_cap = _vmem_capacity_bytes()
    x_budget = max(1 << 20, vmem_cap // 12)

    max_tile = max(8, x_budget // max(bytes_per_row, 1))
    tile_n = min(N, max_tile)
    # Guarantee >= 2 grid steps when the batch allows it so the "parallel"
    # batch axis can actually be sharded across both TensorCores on v7x.
    if N >= 16:
        tile_n = min(tile_n, pl.cdiv(N, 2))
    if tile_n < N:
        tile_n = max(8, (tile_n // 8) * 8)   # output sublane alignment
    grid = (pl.cdiv(N, tile_n),)

    # Explicit VMEM budget: double-buffered x tiles + weights/bias + output
    # tiles + f32 accumulators + headroom.
    x_tile_bytes = tile_n * bytes_per_row
    w_bytes = w_fused.size * jnp.dtype(w_fused.dtype).itemsize
    b_bytes = b_fused.size * jnp.dtype(b_fused.dtype).itemsize
    out_itemsize = jnp.dtype(x_nchw.dtype).itemsize
    out_tile_bytes = tile_n * K * out_itemsize
    acc_bytes = tile_n * (C + K) * 4
    vmem_limit = (2 * x_tile_bytes + 2 * (w_bytes + b_bytes)
                  + 2 * out_tile_bytes + acc_bytes + (8 << 20))
    vmem_limit = int(max(16 << 20, min(vmem_limit, (vmem_cap * 3) // 4)))

    cost = pl.CostEstimate(
        flops=2 * N * C * K + N * C * HW,
        transcendentals=0,
        bytes_accessed=(x_view.size * itemsize + w_bytes + b_bytes
                        + N * K * out_itemsize),
    )

    return pl.pallas_call(
        mlp_kernel,
        out_shape=jax.ShapeDtypeStruct((N, K), x_nchw.dtype),
        grid=grid,
        in_specs=[
            pl.BlockSpec((tile_n, C, HW), lambda i: (i, 0, 0)),   # x tile (pipelined)
            pl.BlockSpec((C, K), lambda i: (0, 0)),               # fused W (resident)
            pl.BlockSpec((1, K), lambda i: (0, 0)),               # fused b (resident)
        ],
        out_specs=pl.BlockSpec((tile_n, K), lambda i: (i, 0)),
        compiler_params=pltpu.CompilerParams(
            dimension_semantics=("parallel",),
            vmem_limit_bytes=vmem_limit,
        ),
        cost_estimate=cost,
    )(x_view, w_fused, b_fused)


def mlp_forward(x_nchw, w1, b1, w2, b2):
    """Convenience wrapper; for repeated calls, cache fuse_mlp_params(...) once."""
    H, W = x_nchw.shape[2], x_nchw.shape[3]
    w_fused, b_fused = fuse_mlp_params(w1, b1, w2, b2, H * W)
    return mlp_forward_fused(x_nchw, w_fused, b_fused)


if __name__ == "__main__":
    # Small shapes consistent with the module: MLP(input_channels=256, num_class=128)
    N, C, H, W = 8, 256, 8, 8
    K = 128

    key = jax.random.PRNGKey(0)
    kx, kw1, kb1, kw2, kb2 = jax.random.split(key, 5)

    x = jax.random.normal(kx, (N, C, H, W), dtype=jnp.float32)

    # Deterministic init mimicking torch.nn.Linear (uniform +/- 1/sqrt(fan_in)).
    lim1 = 1.0 / jnp.sqrt(jnp.float32(C))
    w1 = jax.random.uniform(kw1, (C, C), jnp.float32, -lim1, lim1)   # (out, in)
    b1 = jax.random.uniform(kb1, (C,), jnp.float32, -lim1, lim1)
    lim2 = 1.0 / jnp.sqrt(jnp.float32(C))
    w2 = jax.random.uniform(kw2, (K, C), jnp.float32, -lim2, lim2)   # (out, in)
    b2 = jax.random.uniform(kb2, (K,), jnp.float32, -lim2, lim2)

    # Fused params computed once (cache these across forward calls).
    w_fused, b_fused = fuse_mlp_params(w1, b1, w2, b2, H * W)
    out = mlp_forward_fused(x, w_fused, b_fused)
    jax.block_until_ready(out)

    # Reference check in plain JAX (same semantics as the PyTorch forward:
    # gap -> squeeze -> f1 -> f2).
    # TODO(synk): PyTorch's .squeeze() would drop the batch dim when N == 1;
    # this implementation always keeps (N, K).
    pooled_ref = jnp.mean(x, axis=(2, 3))                 # (N, C)
    ref = (pooled_ref @ w1.T + b1) @ w2.T + b2            # f1 then f2
    assert out.shape == (N, K)
    assert jnp.allclose(out, ref, atol=1e-4, rtol=1e-4)

    print("KERNEL_OK")
</pallas_src>

<mosaic_0001>
module attributes {stable_mosaic.version = 11 : i64} {
  func.func @mlp_kernel(%arg0: i32, %arg1: memref<8x256x64xf32, #tpu.memory_space<vmem>>, %arg2: memref<256x128xf32, #tpu.memory_space<vmem>>, %arg3: memref<1x128xf32, #tpu.memory_space<vmem>>, %arg4: memref<8x128xf32, #tpu.memory_space<vmem>>) attributes {dimension_semantics = [#tpu.dimension_semantics<parallel>], iteration_bounds = array<i64: 1>, scalar_prefetch = 0 : i64, scratch_operands = 0 : i64, tpu.core_type = #tpu.core_type<tc>, window_params = [{transform_indices = @transform_0, window_bounds = array<i64: 8, 256, 64>}, {pipeline_mode = #tpu.pipeline_mode<synchronous>, transform_indices = @transform_1, window_bounds = array<i64: 256, 128>}, {pipeline_mode = #tpu.pipeline_mode<synchronous>, transform_indices = @transform_2, window_bounds = array<i64: 1, 128>}, {transform_indices = @transform_3, window_bounds = array<i64: 8, 128>}]} {
    %c0 = arith.constant 0 : index
    %c0_0 = arith.constant 0 : index
    %c0_1 = arith.constant 0 : index
    %0 = vector.load %arg1[%c0, %c0_0, %c0_1] : memref<8x256x64xf32, #tpu.memory_space<vmem>>, vector<8x256x64xf32>
    %cst = arith.constant dense<0.000000e+00> : vector<8x256xf32>
    %1 = vector.multi_reduction <add>, %0, %cst [2] : vector<8x256x64xf32> to vector<8x256xf32>
    %c0_2 = arith.constant 0 : index
    %c0_3 = arith.constant 0 : index
    %2 = vector.load %arg2[%c0_2, %c0_3] : memref<256x128xf32, #tpu.memory_space<vmem>>, vector<256x128xf32>
    %cst_4 = arith.constant dense<0.000000e+00> : vector<8x128xf32>
    %3 = tpu.matmul %1, %2, %cst_4 {dimension_numbers = #tpu.dot_dimension_numbers<[1], [0], [0], [1], [0, 0, 1, 1], [], []>} : vector<8x256xf32>, vector<256x128xf32>, vector<8x128xf32> -> vector<8x128xf32>
    %c0_5 = arith.constant 0 : index
    %c0_6 = arith.constant 0 : index
    %4 = vector.load %arg3[%c0_5, %c0_6] : memref<1x128xf32, #tpu.memory_space<vmem>>, vector<1x128xf32>
    %5 = vector.broadcast %4 : vector<1x128xf32> to vector<8x128xf32>
    %6 = arith.addf %3, %5 : vector<8x128xf32>
    %c0_7 = arith.constant 0 : index
    %c0_8 = arith.constant 0 : index
    %7 = vector.load %arg4[%c0_7, %c0_8] : memref<8x128xf32, #tpu.memory_space<vmem>>, vector<8x128xf32>
    tpu.vector_store %arg4[%c0_7, %c0_8], %6 {strides = array<i32>} : memref<8x128xf32, #tpu.memory_space<vmem>>, vector<8x128xf32>,
    return
  }
  func.func @transform_0(%arg0: i32) -> (i32, i32, i32) {
    %c0_i32 = arith.constant 0 : i32
    %c0_i32_0 = arith.constant 0 : i32
    %c0_i32_1 = arith.constant 0 : i32
    return %arg0, %c0_i32, %c0_i32_0 : i32, i32, i32
  }
  func.func @transform_1(%arg0: i32) -> (i32, i32) {
    %c0_i32 = arith.constant 0 : i32
    %c0_i32_0 = arith.constant 0 : i32
    %c0_i32_1 = arith.constant 0 : i32
    return %c0_i32, %c0_i32_0 : i32, i32
  }
  func.func @transform_2(%arg0: i32) -> (i32, i32) {
    %c0_i32 = arith.constant 0 : i32
    %c0_i32_0 = arith.constant 0 : i32
    %c0_i32_1 = arith.constant 0 : i32
    return %c0_i32, %c0_i32_0 : i32, i32
  }
  func.func @transform_3(%arg0: i32) -> (i32, i32) {
    %c0_i32 = arith.constant 0 : i32
    %c0_i32_0 = arith.constant 0 : i32
    return %arg0, %c0_i32 : i32, i32
  }
}

</mosaic_0001>

<bundles_post_ra>
// kernel: tpu_custom_call.1
= control target key start
LH: loop header
LB: loop body
LE: loop exit
PB: predicated region body
PF: predicated region fallthrough
CT: control target
= control target key end

     0   :  { %vm271_vm0 = vcmask 523264   ;;  %s4696_s0 = inlined_call_operand.vmem [shape: f32[8,256,64], index: 0, kind: input, shape index: {}]   ;;  %s4697_s1 = inlined_call_operand.vmem [shape: f32[256,128], index: 1, kind: input, shape index: {}]   ;;  %s4698_s2 = inlined_call_operand.vmem [shape: f32[1,128], index: 2, kind: input, shape index: {}]   ;;  %s4699_s3 = inlined_call_operand.hbm [shape: f32[8,128], index: 3, kind: output, shape index: {}]  }
   0x1   :  { %v17_v0 = vld [vmem:[%s4696_s0 + $0x10] sm:$0xff]  ;;  %v15_v1 = vld [vmem:[%s4696_s0] sm:$0xff]  ;;  %v18_v2 = vld [vmem:[%s4696_s0 + $0x18] sm:$0xff] }
   0x2   :  { %v278_v3 = vsel %vm271_vm0, %v17_v0, 0.0  ;;  %v272_v4 = vsel %vm271_vm0, %v15_v1, 0.0  ;;  %v16_v5 = vld [vmem:[%s4696_s0 + $0x8] sm:$0xff]  ;;  %v281_v6 = vsel %vm271_vm0, %v18_v2, 0.0  ;;  %v19_v9 = vld [vmem:[%s4696_s0 + $0x20] sm:$0xff]  ;;  %v22_v12 = vld [vmem:[%s4696_s0 + $0x38] sm:$0xff] }
   0x3   :  { %279 = vadd.xlane.f32.xlu1 %v278_v3  ;;  %273 = vadd.xlane.f32.xlu0 %v272_v4  ;;  %v275_v7 = vsel %vm271_vm0, %v16_v5, 0.0  ;;  %v20_v8 = vld [vmem:[%s4696_s0 + $0x28] sm:$0xff]  ;;  %v284_v11 = vsel %vm271_vm0, %v19_v9, 0.0  ;;  %v21_v13 = vld [vmem:[%s4696_s0 + $0x30] sm:$0xff]  ;;  %v293_v14 = vsel %vm271_vm0, %v22_v12, 0.0  ;;  %v23_v17 = vld [vmem:[%s4696_s0 + $0x40] sm:$0xff] }
   0x4   :  { %v287_v10 = vsel %vm271_vm0, %v20_v8, 0.0  ;;  %v290_v15 = vsel %vm271_vm0, %v21_v13, 0.0  ;;  %v24_v16 = vld [vmem:[%s4696_s0 + $0x48] sm:$0xff]  ;;  %v296_v19 = vsel %vm271_vm0, %v23_v17, 0.0  ;;  %v26_v20 = vld [vmem:[%s4696_s0 + $0x58] sm:$0xff]  ;;  %v25_v21 = vld [vmem:[%s4696_s0 + $0x50] sm:$0xff] }
   0x5   :  { %v299_v18 = vsel %vm271_vm0, %v24_v16, 0.0  ;;  %v305_v22 = vsel %vm271_vm0, %v26_v20, 0.0  ;;  %v302_v23 = vsel %vm271_vm0, %v25_v21, 0.0  ;;  %v28_v24 = vld [vmem:[%s4696_s0 + $0x68] sm:$0xff]  ;;  %v27_v25 = vld [vmem:[%s4696_s0 + $0x60] sm:$0xff]  ;;  %v30_v28 = vld [vmem:[%s4696_s0 + $0x78] sm:$0xff] }
   0x6   :  { %v311_v26 = vsel %vm271_vm0, %v28_v24, 0.0  ;;  %v308_v27 = vsel %vm271_vm0, %v27_v25, 0.0  ;;  %v29_v29 = vld [vmem:[%s4696_s0 + $0x70] sm:$0xff]  ;;  %v317_v30 = vsel %vm271_vm0, %v30_v28, 0.0 }
   0x7   :  { %282 = vadd.xlane.f32.xlu1 %v281_v6  ;;  %276 = vadd.xlane.f32.xlu0 %v275_v7  ;;  %v314_v31 = vsel %vm271_vm0, %v29_v29, 0.0 }
   0xb   :  { %288 = vadd.xlane.f32.xlu1 %v287_v10  ;;  %285 = vadd.xlane.f32.xlu0 %v284_v11 }
   0xf   :  { %294 = vadd.xlane.f32.xlu1 %v293_v14  ;;  %291 = vadd.xlane.f32.xlu0 %v290_v15 }
  0x13   :  { %300 = vadd.xlane.f32.xlu1 %v299_v18  ;;  %297 = vadd.xlane.f32.xlu0 %v296_v19 }
  0x17   :  { %306 = vadd.xlane.f32.xlu1 %v305_v22  ;;  %303 = vadd.xlane.f32.xlu0 %v302_v23 }
  0x1b   :  { %312 = vadd.xlane.f32.xlu1 %v311_v26  ;;  %309 = vadd.xlane.f32.xlu0 %v308_v27 }
  0x1c   :  { %8 = vsyncpa [#allocation3], 0  ;;  %v32_v32 = vld [vmem:[%s4696_s0 + $0x88] sm:$0xff]  ;;  %v31_v33 = vld [vmem:[%s4696_s0 + $0x80] sm:$0xff]  ;;  %vm1346_vm1 = vcmask 130112   ;;  %vm1353_vm2 = vcmask 195712  }
  0x1d   :  { %v323_v34 = vsel %vm271_vm0, %v32_v32, 0.0  ;;  %v320_v35 = vsel %vm271_vm0, %v31_v33, 0.0  ;;  %v34_v36 = vld [vmem:[%s4696_s0 + $0x98] sm:$0xff]  ;;  %v33_v37 = vld [vmem:[%s4696_s0 + $0x90] sm:$0xff]  ;;  %v36_v40 = vld [vmem:[%s4696_s0 + $0xa8] sm:$0xff]  ;;  %vm1360_vm3 = vcmask 261312  }
  0x1e   :  { %v329_v38 = vsel %vm271_vm0, %v34_v36, 0.0  ;;  %v326_v39 = vsel %vm271_vm0, %v33_v37, 0.0  ;;  %v35_v41 = vld [vmem:[%s4696_s0 + $0xa0] sm:$0xff]  ;;  %v335_v42 = vsel %vm271_vm0, %v36_v40, 0.0  ;;  %v38_v44 = vld [vmem:[%s4696_s0 + $0xb8] sm:$0xff]  ;;  %v37_v45 = vld [vmem:[%s4696_s0 + $0xb0] sm:$0xff] }
  0x1f   :  { %318 = vadd.xlane.f32.xlu1 %v317_v30  ;;  %315 = vadd.xlane.f32.xlu0 %v314_v31  ;;  %v332_v43 = vsel %vm271_vm0, %v35_v41, 0.0  ;;  %v341_v46 = vsel %vm271_vm0, %v38_v44, 0.0  ;;  %v338_v47 = vsel %vm271_vm0, %v37_v45, 0.0  ;;  %v40_v48 = vld [vmem:[%s4696_s0 + $0xc8] sm:$0xff]  ;;  %v39_v49 = vld [vmem:[%s4696_s0 + $0xc0] sm:$0xff]  ;;  %v42_v52 = vld [vmem:[%s4696_s0 + $0xd8] sm:$0xff] }
  0x20   :  { %v347_v50 = vsel %vm271_vm0, %v40_v48, 0.0  ;;  %v344_v51 = vsel %vm271_vm0, %v39_v49, 0.0  ;;  %v41_v53 = vld [vmem:[%s4696_s0 + $0xd0] sm:$0xff]  ;;  %v353_v54 = vsel %vm271_vm0, %v42_v52, 0.0  ;;  %v44_v56 = vld [vmem:[%s4696_s0 + $0xe8] sm:$0xff]  ;;  %v43_v57 = vld [vmem:[%s4696_s0 + $0xe0] sm:$0xff] }
  0x21   :  { %v350_v55 = vsel %vm271_vm0, %v41_v53, 0.0  ;;  %v359_v58 = vsel %vm271_vm0, %v44_v56, 0.0  ;;  %v356_v59 = vsel %vm271_vm0, %v43_v57, 0.0  ;;  %v46_v60 = vld [vmem:[%s4696_s0 + $0xf8] sm:$0xff]  ;;  %v45_v61 = vld [vmem:[%s4696_s0 + $0xf0] sm:$0xff]  ;;  %v48_v0 = vld [vmem:[%s4696_s0 + $0x108] sm:$0xff] }
  0x22   :  { %v365_v62 = vsel %vm271_vm0, %v46_v60, 0.0  ;;  %v362_v63 = vsel %vm271_vm0, %v45_v61, 0.0  ;;  %v47_v1 = vld [vmem:[%s4696_s0 + $0x100] sm:$0xff]  ;;  %v371_v2 = vsel %vm271_vm0, %v48_v0, 0.0  ;;  %v50_v4 = vld [vmem:[%s4696_s0 + $0x118] sm:$0xff]  ;;  %v49_v5 = vld [vmem:[%s4696_s0 + $0x110] sm:$0xff] }
  0x23   :  { %324 = vadd.xlane.f32.xlu1 %v323_v34  ;;  %321 = vadd.xlane.f32.xlu0 %v320_v35  ;;  %v368_v3 = vsel %vm271_vm0, %v47_v1, 0.0  ;;  %v377_v6 = vsel %vm271_vm0, %v50_v4, 0.0  ;;  %v374_v7 = vsel %vm271_vm0, %v49_v5, 0.0  ;;  %v52_v8 = vld [vmem:[%s4696_s0 + $0x128] sm:$0xff]  ;;  %v51_v9 = vld [vmem:[%s4696_s0 + $0x120] sm:$0xff]  ;;  %v54_v12 = vld [vmem:[%s4696_s0 + $0x138] sm:$0xff] }
  0x24   :  { %v383_v10 = vsel %vm271_vm0, %v52_v8, 0.0  ;;  %v380_v11 = vsel %vm271_vm0, %v51_v9, 0.0  ;;  %v53_v13 = vld [vmem:[%s4696_s0 + $0x130] sm:$0xff]  ;;  %v389_v14 = vsel %vm271_vm0, %v54_v12, 0.0  ;;  %v56_v16 = vld [vmem:[%s4696_s0 + $0x148] sm:$0xff]  ;;  %v55_v17 = vld [vmem:[%s4696_s0 + $0x140] sm:$0xff] }
  0x25   :  { %v386_v15 = vsel %vm271_vm0, %v53_v13, 0.0  ;;  %v395_v18 = vsel %vm271_vm0, %v56_v16, 0.0  ;;  %v392_v19 = vsel %vm271_vm0, %v55_v17, 0.0  ;;  %v58_v20 = vld [vmem:[%s4696_s0 + $0x158] sm:$0xff]  ;;  %v57_v21 = vld [vmem:[%s4696_s0 + $0x150] sm:$0xff]  ;;  %v60_v24 = vld [vmem:[%s4696_s0 + $0x168] sm:$0xff] }
  0x26   :  { %v401_v22 = vsel %vm271_vm0, %v58_v20, 0.0  ;;  %v398_v23 = vsel %vm271_vm0, %v57_v21, 0.0  ;;  %v59_v25 = vld [vmem:[%s4696_s0 + $0x160] sm:$0xff]  ;;  %v407_v26 = vsel %vm271_vm0, %v60_v24, 0.0  ;;  %v62_v28 = vld [vmem:[%s4696_s0 + $0x178] sm:$0xff]  ;;  %v61_v29 = vld [vmem:[%s4696_s0 + $0x170] sm:$0xff] }
  0x27   :  { %330 = vadd.xlane.f32.xlu1 %v329_v38  ;;  %327 = vadd.xlane.f32.xlu0 %v326_v39  ;;  %v404_v27 = vsel %vm271_vm0, %v59_v25, 0.0  ;;  %v413_v30 = vsel %vm271_vm0, %v62_v28, 0.0  ;;  %v410_v31 = vsel %vm271_vm0, %v61_v29, 0.0  ;;  %v64_v32 = vld [vmem:[%s4696_s0 + $0x188] sm:$0xff]  ;;  %v63_v33 = vld [vmem:[%s4696_s0 + $0x180] sm:$0xff]  ;;  %v66_v36 = vld [vmem:[%s4696_s0 + $0x198] sm:$0xff] }
  0x28   :  { %v419_v34 = vsel %vm271_vm0, %v64_v32, 0.0  ;;  %v416_v35 = vsel %vm271_vm0, %v63_v33, 0.0  ;;  %v65_v37 = vld [vmem:[%s4696_s0 + $0x190] sm:$0xff]  ;;  %v425_v38 = vsel %vm271_vm0, %v66_v36, 0.0  ;;  %v68_v40 = vld [vmem:[%s4696_s0 + $0x1a8] sm:$0xff]  ;;  %v67_v41 = vld [vmem:[%s4696_s0 + $0x1a0] sm:$0xff] }
  0x29   :  { %v422_v39 = vsel %vm271_vm0, %v65_v37, 0.0  ;;  %v70_v44 = vld [vmem:[%s4696_s0 + $0x1b8] sm:$0xff]  ;;  %v69_v45 = vld [vmem:[%s4696_s0 + $0x1b0] sm:$0xff]  ;;  %v72_v48 = vld [vmem:[%s4696_s0 + $0x1c8] sm:$0xff]  ;;  %vm1367_vm4 = vcmask 326912   ;;  %vm1374_vm5 = vcmask 392512  }
  0x2a   :  { %v71_v49 = vld [vmem:[%s4696_s0 + $0x1c0] sm:$0xff]  ;;  %v74_v52 = vld [vmem:[%s4696_s0 + $0x1d8] sm:$0xff]  ;;  %v73_v53 = vld [vmem:[%s4696_s0 + $0x1d0] sm:$0xff]  ;;  %vm1381_vm6 = vcmask 458112   ;;  %vm1388_vm7 = vcmask 523712   ;;  %vm1395_vm8 = vcmask 589312  }
  0x2b   :  { %336 = vadd.xlane.f32.xlu1 %v335_v42  ;;  %333 = vadd.xlane.f32.xlu0 %v332_v43  ;;  %v431_v42 = vsel %vm271_vm0, %v68_v40, 0.0  ;;  %v428_v43 = vsel %vm271_vm0, %v67_v41, 0.0  ;;  %v76_v56 = vld [vmem:[%s4696_s0 + $0x1e8] sm:$0xff]  ;;  %v75_v57 = vld [vmem:[%s4696_s0 + $0x1e0] sm:$0xff]  ;;  %v78_v60 = vld [vmem:[%s4696_s0 + $0x1f8] sm:$0xff]  ;;  %vm1402_vm9 = vcmask 654912  }
  0x2c   :  { %v77_v61 = vld [vmem:[%s4696_s0 + $0x1f0] sm:$0xff]  ;;  %v80_v0 = vld [vmem:[%s4696_s0 + $0x208] sm:$0xff]  ;;  %v79_v1 = vld [vmem:[%s4696_s0 + $0x200] sm:$0xff]  ;;  %vm4701_vm10 = vcmask 720512   ;;  %vm1416_vm11 = vcmask 786112   ;;  %vm4700_vm12 = vcmask 851712  }
  0x2d   :  { %v82_v4 = vld [vmem:[%s4696_s0 + $0x218] sm:$0xff]  ;;  %v81_v5 = vld [vmem:[%s4696_s0 + $0x210] sm:$0xff]  ;;  %v84_v8 = vld [vmem:[%s4696_s0 + $0x228] sm:$0xff]  ;;  %vm1430_vm13 = vcmask 917312   ;;  %vm1437_vm14 = vcmask 982912   ;;  %vm1444_vm15 = vcmask 1048512  }
  0x2e   :  { %v83_v9 = vld [vmem:[%s4696_s0 + $0x220] sm:$0xff]  ;;  %v86_v13 = vld [vmem:[%s4696_s0 + $0x238] sm:$0xff]  ;;  %v89_v33 = vld [vmem:[%s4696_s0 + $0x250] sm:$0xff]  ;;  %s2832_s20 = smov [#allocation2]  }
  0x2f   :  { %342 = vadd.xlane.f32.xlu1 %v341_v46  ;;  %339 = vadd.xlane.f32.xlu0 %v338_v47  ;;  %v437_v46 = vsel %vm271_vm0, %v70_v44, 0.0  ;;  %v434_v47 = vsel %vm271_vm0, %v69_v45, 0.0  ;;  %v476_v12 = vsel %vm271_vm0, %v83_v9, 0.0  ;;  %v485_v16 = vsel %vm271_vm0, %v86_v13, 0.0  ;;  %v87_v20 = vld [vmem:[%s4696_s0 + $0x240] sm:$0xff]  ;;  %v90_v28 = vld [vmem:[%s4696_s0 + $0x258] sm:$0xff] }
  0x30   :  { %v497_v36 = vsel %vm271_vm0, %v90_v28, 0.0  ;;  %v92_v41 = vld [vmem:[%s4696_s0 + $0x268] sm:$0xff]  ;;  %v95_v9 = vld [vmem:[%s4696_s0 + $0x280] sm:$0xff]  ;;  %s2731_s21 = sshll.u32 %s2832_s20, 4  ;;  %s2732_s21 = int_to_ptr.vmem [resolvable:$true] %s2731_s21 }
  0x31   :  { %s2808_s22 = scalar_lea.vmem %s2732_s21, 128  ;;  %p2813_p1 = scmp.lt.s32.totalorder %s2732_s21, %s2732_s21 }
  0x32   :  { %p2809_p0 = scmp.ne.s32.totalorder %s2732_s21, %s2808_s22  ;;  %p2814_p2 = scmp.lt.s32.totalorder %s2808_s22, %s2808_s22 }
  0x33   :  { %348 = vadd.xlane.f32.xlu1 %v347_v50  ;;  %345 = vadd.xlane.f32.xlu0 %v344_v51  ;;  %v443_v50 = vsel %vm271_vm0, %v72_v48, 0.0  ;;  %v440_v51 = vsel %vm271_vm0, %v71_v49, 0.0 }
  0x34   :  { %p2815_p3 = por %p2814_p2, %p2813_p1 }
  0x36   :  { %p2816_p4 = pnand %p2815_p3, %p2809_p0 }
  0x37   :  { %354 = vadd.xlane.f32.xlu1 %v353_v54  ;;  %351 = vadd.xlane.f32.xlu0 %v350_v55  ;;  %v449_v54 = vsel %vm271_vm0, %v74_v52, 0.0  ;;  %v446_v55 = vsel %vm271_vm0, %v73_v53, 0.0 }
  0x3b   :  { %360 = vadd.xlane.f32.xlu1 %v359_v58  ;;  %357 = vadd.xlane.f32.xlu0 %v356_v59  ;;  %v455_v58 = vsel %vm271_vm0, %v76_v56, 0.0  ;;  %v452_v59 = vsel %vm271_vm0, %v75_v57, 0.0 }
  0x3f   :  { %366 = vadd.xlane.f32.xlu1 %v365_v62  ;;  %363 = vadd.xlane.f32.xlu0 %v362_v63  ;;  %v461_v62 = vsel %vm271_vm0, %v78_v60, 0.0  ;;  %v458_v63 = vsel %vm271_vm0, %v77_v61, 0.0 }
  0x43   :  { %372 = vadd.xlane.f32.xlu1 %v371_v2  ;;  %369 = vadd.xlane.f32.xlu0 %v368_v3  ;;  %v467_v2 = vsel %vm271_vm0, %v80_v0, 0.0  ;;  %v464_v3 = vsel %vm271_vm0, %v79_v1, 0.0 }
  0x47   :  { %378 = vadd.xlane.f32.xlu1 %v377_v6  ;;  %375 = vadd.xlane.f32.xlu0 %v374_v7  ;;  %v473_v6 = vsel %vm271_vm0, %v82_v4, 0.0  ;;  %v470_v7 = vsel %vm271_vm0, %v81_v5, 0.0 }
  0x4b   :  { %384 = vadd.xlane.f32.xlu1 %v383_v10  ;;  %381 = vadd.xlane.f32.xlu0 %v380_v11  ;;  %v1335_v10 = vlaneseq  ;;  %v479_v11 = vsel %vm271_vm0, %v84_v8, 0.0  ;;  %v96_v8 = vld [vmem:[%s4696_s0 + $0x288] sm:$0xff] }
  0x4f   :  { %390 = vadd.xlane.f32.xlu1 %v389_v14  ;;  %387 = vadd.xlane.f32.xlu0 %v386_v15  ;;  %v85_v14 = vld [vmem:[%s4696_s0 + $0x230] sm:$0xff]  ;;  %v3139_v15 = vand.u32 127, %v1335_v10 }
  0x50   :  { %v482_v17 = vsel %vm271_vm0, %v85_v14, 0.0 }
  0x51   :  { %v1355_v21 = vadd.s32 4294967272, %v3139_v15  ;;  %v1369_v29 = vadd.s32 4294967256, %v3139_v15  ;;  %v1376_v44 = vadd.s32 4294967248, %v3139_v15  ;;  %v1397_v60 = vadd.s32 4294967224, %v3139_v15 }
  0x52   :  { %v1390_v0 = vadd.s32 4294967232, %v3139_v15  ;;  %v1404_v14 = vadd.s32 4294967216, %v3139_v15 }
  0x53   :  { %396 = vadd.xlane.f32.xlu1 %v395_v18  ;;  %393 = vadd.xlane.f32.xlu0 %v392_v19  ;;  %v3143_v18 = vshrl.u32 %v1335_v10, 7  ;;  %v88_v19 = vld [vmem:[%s4696_s0 + $0x248] sm:$0xff]  ;;  %v1411_v10 = vadd.s32 4294967208, %v3139_v15 }
  0x55   :  { %v3180_v40 = vsub.s32 %v1369_v29, %v3143_v18  ;;  %v3205_v57 = vsub.s32 %v1376_v44, %v3143_v18  ;;  %v3235_v13 = vsub.s32 %v1390_v0, %v3143_v18  ;;  %v3253_v29 = vsub.s32 %v1411_v10, %v3143_v18 }
  0x57   :  { %402 = vadd.xlane.f32.xlu1 %v401_v22  ;;  %399 = vadd.xlane.f32.xlu0 %v398_v23  ;;  %v1341_v22 = vadd.s32 4294967288, %v3139_v15  ;;  %v1348_v23 = vadd.s32 4294967280, %v3139_v15 }
  0x59   :  { %v3168_v32 = vsub.s32 %v1341_v22, %v3143_v18 }
  0x5b   :  { %408 = vadd.xlane.f32.xlu1 %v407_v26  ;;  %405 = vadd.xlane.f32.xlu0 %v404_v27  ;;  %v491_v26 = vsel %vm271_vm0, %v88_v19, 0.0  ;;  %v488_v27 = vsel %vm271_vm0, %v87_v20, 0.0  ;;  %v512_v19 = vsel %vm271_vm0, %v95_v9, 0.0  ;;  %v103_v9 = vld [vmem:[%s4696_s0 + $0x2c0] sm:$0xff] }
  0x5f   :  { %414 = vadd.xlane.f32.xlu1 %v413_v30  ;;  %411 = vadd.xlane.f32.xlu0 %v410_v31  ;;  %v3162_v30 = vsub.s32 %v3139_v15, %v3143_v18  ;;  %v3165_v31 = vsub.s32 %v1355_v21, %v3143_v18 }
  0x63   :  { %420 = vadd.xlane.f32.xlu1 %v419_v34  ;;  %417 = vadd.xlane.f32.xlu0 %v416_v35  ;;  %v1362_v34 = vadd.s32 4294967264, %v3139_v15  ;;  %v3175_v35 = vsub.s32 %v1348_v23, %v3143_v18  ;;  %v98_v23 = vld [vmem:[%s4696_s0 + $0x298] sm:$0xff] }
  0x65   :  { %v3194_v48 = vsub.s32 %v1362_v34, %v3143_v18 }
  0x67   :  { %426 = vadd.xlane.f32.xlu1 %v425_v38  ;;  %423 = vadd.xlane.f32.xlu0 %v422_v39  ;;  %v494_v39 = vsel %vm271_vm0, %v89_v33, 0.0  ;;  %v3256_v33 = vsub.s32 %v1404_v14, %v3143_v18 }
  0x6b   :  { %432 = vadd.xlane.f32.xlu1 %v431_v42  ;;  %429 = vadd.xlane.f32.xlu0 %v428_v43  ;;  %v91_v42 = vld [vmem:[%s4696_s0 + $0x260] sm:$0xff]  ;;  %v1383_v43 = vadd.s32 4294967240, %v3139_v15 }
  0x6c   :  { %v500_v52 = vsel %vm271_vm0, %v91_v42, 0.0 }
  0x6d   :  { %v3202_v56 = vsub.s32 %v1383_v43, %v3143_v18 }
  0x6f   :  { %438 = vadd.xlane.f32.xlu1 %v437_v46  ;;  %435 = vadd.xlane.f32.xlu0 %v434_v47 }
  0x73   :  { %444 = vadd.xlane.f32.xlu1 %v443_v50  ;;  %441 = vadd.xlane.f32.xlu0 %v440_v51  ;;  %v503_v51 = vsel %vm271_vm0, %v92_v41, 0.0 }
  0x77   :  { %450 = vadd.xlane.f32.xlu1 %v449_v54  ;;  %447 = vadd.xlane.f32.xlu0 %v446_v55 }
  0x7b   :  { %456 = vadd.xlane.f32.xlu1 %v455_v58  ;;  %453 = vadd.xlane.f32.xlu0 %v452_v59  ;;  %v94_v58 = vld [vmem:[%s4696_s0 + $0x278] sm:$0xff]  ;;  %v93_v59 = vld [vmem:[%s4696_s0 + $0x270] sm:$0xff] }
  0x7f   :  { %462 = vadd.xlane.f32.xlu1 %v461_v62  ;;  %459 = vadd.xlane.f32.xlu0 %v458_v63 }
  0x83   :  { %468 = vadd.xlane.f32.xlu1 %v467_v2  ;;  %465 = vadd.xlane.f32.xlu0 %v464_v3  ;;  %v509_v2 = vsel %vm271_vm0, %v94_v58, 0.0  ;;  %v506_v3 = vsel %vm271_vm0, %v93_v59, 0.0 }
  0x87   :  { %474 = vadd.xlane.f32.xlu1 %v473_v6  ;;  %471 = vadd.xlane.f32.xlu0 %v470_v7  ;;  %v3223_v7 = vsub.s32 %v1397_v60, %v3143_v18 }
  0x8b   :  { %480 = vadd.xlane.f32.xlu1 %v479_v11  ;;  %477 = vadd.xlane.f32.xlu0 %v476_v12 }
  0x8f   :  { %486 = vadd.xlane.f32.xlu1 %v485_v16  ;;  %483 = vadd.xlane.f32.xlu0 %v482_v17  ;;  %v515_v17 = vsel %vm271_vm0, %v96_v8, 0.0  ;;  %v104_v8 = vld [vmem:[%s4696_s0 + $0x2c8] sm:$0xff] }
  0x90   :  { %v280_v24 = vpop.xlane.xlu1 %279  ;;  %v274_v25 = vpop.xlane.xlu0 %273 }
  0x91   :  { %v1340_v45 = vrot.slane %v274_v25, %v3162_v30  ;;  %v1352_v49 = vrot.slane %v280_v24, %v3175_v35  ;;  %v97_v24 = vld [vmem:[%s4696_s0 + $0x290] sm:$0xff]  ;;  %v1425_v25 = vadd.s32 4294967192, %v3139_v15 }
  0x93   :  { %492 = vadd.xlane.f32.xlu1 %v491_v26  ;;  %489 = vadd.xlane.f32.xlu0 %v488_v27  ;;  %v1418_v26 = vadd.s32 4294967200, %v3139_v15  ;;  %v3263_v42 = vsub.s32 %v1425_v25, %v3143_v18 }
  0x94   :  { %v283_v37 = vpop.xlane.xlu1 %282  ;;  %v277_v38 = vpop.xlane.xlu0 %276 }
  0x95   :  { %v1359_v46 = vrot.slane %v283_v37, %v3165_v31  ;;  %v1345_v47 = vrot.slane %v277_v38, %v3168_v32  ;;  %v518_v37 = vsel %vm271_vm0, %v97_v24, 0.0  ;;  %v3266_v43 = vsub.s32 %v1418_v26, %v3143_v18 }
  0x97   :  { %v1347_v50 = vsel %vm1346_vm1, %v1345_v47, %v1340_v45  ;;  %498 = vadd.xlane.f32.xlu1 %v497_v36  ;;  %495 = vadd.xlane.f32.xlu0 %v494_v39  ;;  %v521_v36 = vsel %vm271_vm0, %v98_v23, 0.0  ;;  %v99_v47 = vld [vmem:[%s4696_s0 + $0x2a0] sm:$0xff] }
  0x98   :  { %v1354_v53 = vsel %vm1353_vm2, %v1352_v49, %v1347_v50  ;;  %v289_v54 = vpop.xlane.xlu1 %288  ;;  %v286_v55 = vpop.xlane.xlu0 %285  ;;  %v1439_v49 = vadd.s32 4294967176, %v3139_v15  ;;  %v1432_v50 = vadd.s32 4294967184, %v3139_v15  ;;  %v524_v58 = vsel %vm271_vm0, %v99_v47, 0.0 }
  0x99   :  { %v1373_v61 = vrot.slane %v289_v54, %v3180_v40  ;;  %v1361_v62 = vsel %vm1360_vm3, %v1359_v46, %v1354_v53  ;;  %v1366_v63 = vrot.slane %v286_v55, %v3194_v48  ;;  %v100_v46 = vld [vmem:[%s4696_s0 + $0x2a8] sm:$0xff] }
  0x9a   :  { %v527_v55 = vsel %vm271_vm0, %v100_v46, 0.0  ;;  %v3285_v15 = vsub.s32 %v1439_v49, %v3143_v18 }
  0x9b   :  { %v1368_v1 = vsel %vm1367_vm4, %v1366_v63, %v1361_v62  ;;  %504 = vadd.xlane.f32.xlu1 %v503_v51  ;;  %501 = vadd.xlane.f32.xlu0 %v500_v52  ;;  %v102_v62 = vld [vmem:[%s4696_s0 + $0x2b8] sm:$0xff]  ;;  %v101_v63 = vld [vmem:[%s4696_s0 + $0x2b0] sm:$0xff] }
  0x9c   :  { %v295_v4 = vpop.xlane.xlu1 %294  ;;  %v1375_v5 = vsel %vm1374_vm5, %v1373_v61, %v1368_v1  ;;  %v292_v6 = vpop.xlane.xlu0 %291  ;;  %v3288_v61 = vsub.s32 %v1432_v50, %v3143_v18  ;;  %v533_v18 = vsel %vm271_vm0, %v102_v62, 0.0  ;;  %v110_v50 = vld [vmem:[%s4696_s0 + $0x2f8] sm:$0xff] }
  0x9d   :  { %v1387_v11 = vrot.slane %v295_v4, %v3202_v56  ;;  %v1380_v12 = vrot.slane %v292_v6, %v3205_v57  ;;  %v530_v4 = vsel %vm271_vm0, %v101_v63, 0.0  ;;  %v112_v63 = vld [vmem:[%s4696_s0 + $0x308] sm:$0xff] }
  0x9f   :  { %v1382_v16 = vsel %vm1381_vm6, %v1380_v12, %v1375_v5  ;;  %510 = vadd.xlane.f32.xlu1 %v509_v2  ;;  %507 = vadd.xlane.f32.xlu0 %v506_v3 }
  0xa0   :  { %v301_v20 = vpop.xlane.xlu1 %300  ;;  %v1389_v21 = vsel %vm1388_vm7, %v1387_v11, %v1382_v16  ;;  %v298_v22 = vpop.xlane.xlu0 %297  ;;  %v539_v16 = vsel %vm271_vm0, %v104_v8, 0.0 }
  0xa1   :  { %v1401_v27 = vrot.slane %v301_v20, %v3223_v7  ;;  %v1394_v28 = vrot.slane %v298_v22, %v3235_v13  ;;  %v105_v22 = vld [vmem:[%s4696_s0 + $0x2d0] sm:$0xff] }
  0xa3   :  { %v1396_v34 = vsel %vm1395_vm8, %v1394_v28, %v1389_v21  ;;  %516 = vadd.xlane.f32.xlu1 %v515_v17  ;;  %513 = vadd.xlane.f32.xlu0 %v512_v19  ;;  %v536_v17 = vsel %vm271_vm0, %v103_v9, 0.0  ;;  %v106_v21 = vld [vmem:[%s4696_s0 + $0x2d8] sm:$0xff] }
  0xa4   :  { %v307_v38 = vpop.xlane.xlu1 %306  ;;  %v1403_v39 = vsel %vm1402_vm9, %v1401_v27, %v1396_v34  ;;  %v304_v41 = vpop.xlane.xlu0 %303  ;;  %v545_v26 = vsel %vm271_vm0, %v106_v21, 0.0  ;;  %v542_v27 = vsel %vm271_vm0, %v105_v22, 0.0  ;;  %v114_v9 = vld [vmem:[%s4696_s0 + $0x318] sm:$0xff] }
  0xa5   :  { %v1415_v44 = vrot.slane %v307_v38, %v3253_v29  ;;  %v1408_v45 = vrot.slane %v304_v41, %v3256_v33 }
  0xa7   :  { %v1410_v51 = vsel %vm4701_vm10, %v1408_v45, %v1403_v39  ;;  %522 = vadd.xlane.f32.xlu1 %v521_v36  ;;  %519 = vadd.xlane.f32.xlu0 %v518_v37  ;;  %v108_v36 = vld [vmem:[%s4696_s0 + $0x2e8] sm:$0xff]  ;;  %v107_v37 = vld [vmem:[%s4696_s0 + $0x2e0] sm:$0xff] }
  0xa8   :  { %v313_v52 = vpop.xlane.xlu1 %312  ;;  %v1417_v53 = vsel %vm1416_vm11, %v1415_v44, %v1410_v51  ;;  %v310_v54 = vpop.xlane.xlu0 %309  ;;  %v551_v45 = vsel %vm271_vm0, %v108_v36, 0.0  ;;  %v548_v46 = vsel %vm271_vm0, %v107_v37, 0.0  ;;  %v109_v51 = vld [vmem:[%s4696_s0 + $0x2f0] sm:$0xff] }
  0xa9   :  { %v1429_v59 = vrot.slane %v313_v52, %v3263_v42  ;;  %v1422_v60 = vrot.slane %v310_v54, %v3266_v43 }
  0xab   :  { %v1424_v0 = vsel %vm4700_vm12, %v1422_v60, %v1417_v53  ;;  %528 = vadd.xlane.f32.xlu1 %v527_v55  ;;  %525 = vadd.xlane.f32.xlu0 %v524_v58  ;;  %v557_v58 = vsel %vm271_vm0, %v110_v50, 0.0 }
  0xac   :  { %v319_v1 = vpop.xlane.xlu1 %318  ;;  %v1431_v2 = vsel %vm1430_vm13, %v1429_v59, %v1424_v0  ;;  %v316_v3 = vpop.xlane.xlu0 %315  ;;  %v554_v59 = vsel %vm271_vm0, %v109_v51, 0.0  ;;  %v111_v0 = vld [vmem:[%s4696_s0 + $0x300] sm:$0xff] }
  0xad   :  { %v1443_v5 = vrot.slane %v319_v1, %v3285_v15  ;;  %v1436_v6 = vrot.slane %v316_v3, %v3288_v61 }
  0xaf   :  { %v1438_v10 = vsel %vm1437_vm14, %v1436_v6, %v1431_v2  ;;  %534 = vadd.xlane.f32.xlu1 %v533_v18  ;;  %531 = vadd.xlane.f32.xlu0 %v530_v4  ;;  %v563_v4 = vsel %vm271_vm0, %v112_v63, 0.0 }
  0xb0   :  { %v3310_v11 = vsel %vm1444_vm15, %v1443_v5, %v1438_v10  ;;  %v325_v12 = vpop.xlane.xlu1 %324  ;;  %v322_v14 = vpop.xlane.xlu0 %321  ;;  %v560_v5 = vsel %vm271_vm0, %v111_v0, 0.0  ;;  %v113_v10 = vld [vmem:[%s4696_s0 + $0x310] sm:$0xff] }
  0xb1   :  { %v1453_v19 = vrot.slane %v325_v12, %v3168_v32  ;;  %v1449_v20 = vrot.slane %v322_v14, %v3162_v30 }
  0xb3   :  { %v1454_v23 = vsel %vm1346_vm1, %v1453_v19, %v1449_v20  ;;  %540 = vadd.xlane.f32.xlu1 %v539_v16  ;;  %537 = vadd.xlane.f32.xlu0 %v536_v17  ;;  %v569_v19 = vsel %vm271_vm0, %v114_v9, 0.0  ;;  %v566_v20 = vsel %vm271_vm0, %v113_v10, 0.0 }
  0xb4   :  { %v331_v24 = vpop.xlane.xlu1 %330  ;;  %v328_v25 = vpop.xlane.xlu0 %327 }
  0xb5   :  { %v1463_v28 = vrot.slane %v331_v24, %v3165_v31  ;;  %v1458_v34 = vrot.slane %v328_v25, %v3175_v35  ;;  %v127_v24 = vld [vmem:[%s4696_s0 + $0x380] sm:$0xff] }
  0xb6   :  { %v608_v36 = vsel %vm271_vm0, %v127_v24, 0.0 }
  0xb7   :  { %v1459_v38 = vsel %vm1353_vm2, %v1458_v34, %v1454_v23  ;;  %546 = vadd.xlane.f32.xlu1 %v545_v26  ;;  %543 = vadd.xlane.f32.xlu0 %v542_v27  ;;  %v128_v23 = vld [vmem:[%s4696_s0 + $0x388] sm:$0xff] }
  0xb8   :  { %v337_v39 = vpop.xlane.xlu1 %336  ;;  %v1464_v41 = vsel %vm1360_vm3, %v1463_v28, %v1459_v38  ;;  %v334_v44 = vpop.xlane.xlu0 %333  ;;  %v611_v34 = vsel %vm271_vm0, %v128_v23, 0.0 }
  0xb9   :  { %v1473_v47 = vrot.slane %v337_v39, %v3180_v40  ;;  %v1468_v49 = vrot.slane %v334_v44, %v3194_v48  ;;  %v159_v39 = vld [vmem:[%s4696_s0 + $0x480] sm:$0xff] }
  0xbb   :  { %v1469_v52 = vsel %vm1367_vm4, %v1468_v49, %v1464_v41  ;;  %552 = vadd.xlane.f32.xlu1 %v551_v45  ;;  %549 = vadd.xlane.f32.xlu0 %v548_v46  ;;  %v129_v41 = vld [vmem:[%s4696_s0 + $0x390] sm:$0xff]  ;;  %v704_v49 = vsel %vm271_vm0, %v159_v39, 0.0 }
  0xbc   :  { %v343_v53 = vpop.xlane.xlu1 %342  ;;  %v1474_v54 = vsel %vm1374_vm5, %v1473_v47, %v1469_v52  ;;  %v340_v55 = vpop.xlane.xlu0 %339  ;;  %v614_v50 = vsel %vm271_vm0, %v129_v41, 0.0 }
  0xbd   :  { %v1483_v60 = vrot.slane %v343_v53, %v3202_v56  ;;  %v1478_v62 = vrot.slane %v340_v55, %v3205_v57  ;;  %v130_v53 = vld [vmem:[%s4696_s0 + $0x398] sm:$0xff] }
  0xbf   :  { %v1479_v1 = vsel %vm1381_vm6, %v1478_v62, %v1474_v54  ;;  %558 = vadd.xlane.f32.xlu1 %v557_v58  ;;  %555 = vadd.xlane.f32.xlu0 %v554_v59  ;;  %v160_v54 = vld [vmem:[%s4696_s0 + $0x488] sm:$0xff]  ;;  %v617_v62 = vsel %vm271_vm0, %v130_v53, 0.0 }
  0xc0   :  { %v349_v2 = vpop.xlane.xlu1 %348  ;;  %v1484_v3 = vsel %vm1388_vm7, %v1483_v60, %v1479_v1  ;;  %v346_v18 = vpop.xlane.xlu0 %345  ;;  %v707_v63 = vsel %vm271_vm0, %v160_v54, 0.0 }
  0xc1   :  { %v1493_v6 = vrot.slane %v349_v2, %v3223_v7  ;;  %v1488_v8 = vrot.slane %v346_v18, %v3235_v13  ;;  %v144_v2 = vld [vmem:[%s4696_s0 + $0x408] sm:$0xff] }
  0xc3   :  { %v1489_v12 = vsel %vm1395_vm8, %v1488_v8, %v1484_v3  ;;  %564 = vadd.xlane.f32.xlu1 %v563_v4  ;;  %561 = vadd.xlane.f32.xlu0 %v560_v5  ;;  %v143_v3 = vld [vmem:[%s4696_s0 + $0x400] sm:$0xff] }
  0xc4   :  { %v355_v14 = vpop.xlane.xlu1 %354  ;;  %v1494_v16 = vsel %vm1402_vm9, %v1493_v6, %v1489_v12  ;;  %v352_v17 = vpop.xlane.xlu0 %351  ;;  %v659_v6 = vsel %vm271_vm0, %v144_v2, 0.0  ;;  %v656_v8 = vsel %vm271_vm0, %v143_v3, 0.0  ;;  %v191_v12 = vld [vmem:[%s4696_s0 + $0x580] sm:$0xff] }
  0xc5   :  { %v1503_v21 = vrot.slane %v355_v14, %v3253_v29  ;;  %v1498_v22 = vrot.slane %v352_v17, %v3256_v33  ;;  %v161_v14 = vld [vmem:[%s4696_s0 + $0x490] sm:$0xff] }
  0xc7   :  { %v1499_v25 = vsel %vm4701_vm10, %v1498_v22, %v1494_v16  ;;  %570 = vadd.xlane.f32.xlu1 %v569_v19  ;;  %567 = vadd.xlane.f32.xlu0 %v566_v20  ;;  %v710_v22 = vsel %vm271_vm0, %v161_v14, 0.0 }
  0xc8   :  { %v361_v26 = vpop.xlane.xlu1 %360  ;;  %v1504_v27 = vsel %vm1416_vm11, %v1503_v21, %v1499_v25  ;;  %v358_v28 = vpop.xlane.xlu0 %357  ;;  %v800_v21 = vsel %vm271_vm0, %v191_v12, 0.0  ;;  %v131_v25 = vld [vmem:[%s4696_s0 + $0x3a0] sm:$0xff] }
  0xc9   :  { %v1513_v37 = vrot.slane %v361_v26, %v3263_v42  ;;  %v1508_v38 = vrot.slane %v358_v28, %v3266_v43  ;;  %v192_v26 = vld [vmem:[%s4696_s0 + $0x588] sm:$0xff] }
  0xcb   :  { %v1509_v44 = vsel %vm4700_vm12, %v1508_v38, %v1504_v27  ;;  %612 = vadd.xlane.f32.xlu1 %v611_v34  ;;  %609 = vadd.xlane.f32.xlu0 %v608_v36  ;;  %v803_v38 = vsel %vm271_vm0, %v192_v26, 0.0 }
  0xcc   :  { %v367_v45 = vpop.xlane.xlu1 %366  ;;  %v1514_v46 = vsel %vm1430_vm13, %v1513_v37, %v1509_v44  ;;  %v364_v47 = vpop.xlane.xlu0 %363  ;;  %v620_v37 = vsel %vm271_vm0, %v131_v25, 0.0  ;;  %v162_v44 = vld [vmem:[%s4696_s0 + $0x498] sm:$0xff] }
  0xcd   :  { %v1523_v51 = vrot.slane %v367_v45, %v3285_v15  ;;  %v1518_v52 = vrot.slane %v364_v47, %v3288_v61  ;;  %v145_v45 = vld [vmem:[%s4696_s0 + $0x410] sm:$0xff] }
  0xcf   :  { %v1519_v55 = vsel %vm1437_vm14, %v1518_v52, %v1514_v46  ;;  %705 = vadd.xlane.f32.xlu1 %v704_v49  ;;  %615 = vadd.xlane.f32.xlu0 %v614_v50  ;;  %v662_v52 = vsel %vm271_vm0, %v145_v45, 0.0 }
  0xd0   :  { %v3407_v58 = vsel %vm1444_vm15, %v1523_v51, %v1519_v55  ;;  %v373_v59 = vpop.xlane.xlu1 %372  ;;  %v370_v60 = vpop.xlane.xlu0 %369  ;;  %v713_v51 = vsel %vm271_vm0, %v162_v44, 0.0  ;;  %v176_v55 = vld [vmem:[%s4696_s0 + $0x508] sm:$0xff] }
  0xd1   :  { %v1532_v0 = vrot.slane %v373_v59, %v3168_v32  ;;  %v1528_v1 = vrot.slane %v370_v60, %v3162_v30  ;;  %v175_v59 = vld [vmem:[%s4696_s0 + $0x500] sm:$0xff] }
  0xd2   :  { %v752_v2 = vsel %vm271_vm0, %v175_v59, 0.0 }
  0xd3   :  { %v1533_v18 = vsel %vm1346_vm1, %v1532_v0, %v1528_v1  ;;  %618 = vadd.xlane.f32.xlu1 %v617_v62  ;;  %708 = vadd.xlane.f32.xlu0 %v707_v63  ;;  %v755_v1 = vsel %vm271_vm0, %v176_v55, 0.0 }
  0xd4   :  { %v379_v4 = vpop.xlane.xlu1 %378  ;;  %v376_v5 = vpop.xlane.xlu0 %375 }
  0xd5   :  { %v1542_v9 = vrot.slane %v379_v4, %v3165_v31  ;;  %v1537_v10 = vrot.slane %v376_v5, %v3175_v35  ;;  %v223_v4 = vld [vmem:[%s4696_s0 + $0x680] sm:$0xff]  ;;  %v193_v5 = vld [vmem:[%s4696_s0 + $0x590] sm:$0xff] }
  0xd6   :  { %v896_v12 = vsel %vm271_vm0, %v223_v4, 0.0  ;;  %v806_v14 = vsel %vm271_vm0, %v193_v5, 0.0 }
  0xd7   :  { %v1538_v16 = vsel %vm1353_vm2, %v1537_v10, %v1533_v18  ;;  %660 = vadd.xlane.f32.xlu1 %v659_v6  ;;  %657 = vadd.xlane.f32.xlu0 %v656_v8 }
  0xd8   :  { %v385_v17 = vpop.xlane.xlu1 %384  ;;  %v1543_v19 = vsel %vm1360_vm3, %v1542_v9, %v1538_v16  ;;  %v382_v20 = vpop.xlane.xlu0 %381 }
  0xd9   :  { %v1552_v23 = vrot.slane %v385_v17, %v3180_v40  ;;  %v1547_v24 = vrot.slane %v382_v20, %v3194_v48  ;;  %v224_v20 = vld [vmem:[%s4696_s0 + $0x688] sm:$0xff] }
  0xda   :  { %v899_v26 = vsel %vm271_vm0, %v224_v20, 0.0 }
  0xdb   :  { %v1548_v27 = vsel %vm1367_vm4, %v1547_v24, %v1543_v19  ;;  %801 = vadd.xlane.f32.xlu1 %v800_v21  ;;  %711 = vadd.xlane.f32.xlu0 %v710_v22  ;;  %v115_v19 = vld [vmem:[%s4696_s0 + $0x320] sm:$0xff] }
  0xdc   :  { %v391_v28 = vpop.xlane.xlu1 %390  ;;  %v1553_v34 = vsel %vm1374_vm5, %v1552_v23, %v1548_v27  ;;  %v388_v36 = vpop.xlane.xlu0 %387  ;;  %v572_v25 = vsel %vm271_vm0, %v115_v19, 0.0 }
  0xdd   :  { %v1562_v39 = vrot.slane %v391_v28, %v3202_v56  ;;  %v1557_v41 = vrot.slane %v388_v36, %v3205_v57  ;;  %v132_v36 = vld [vmem:[%s4696_s0 + $0x3a8] sm:$0xff] }
  0xde   :  { %v623_v45 = vsel %vm271_vm0, %v132_v36, 0.0 }
  0xdf   :  { %v1558_v46 = vsel %vm1381_vm6, %v1557_v41, %v1553_v34  ;;  %621 = vadd.xlane.f32.xlu1 %v620_v37  ;;  %804 = vadd.xlane.f32.xlu0 %v803_v38  ;;  %v146_v34 = vld [vmem:[%s4696_s0 + $0x418] sm:$0xff] }
  0xe0   :  { %v397_v47 = vpop.xlane.xlu1 %396  ;;  %v1563_v49 = vsel %vm1388_vm7, %v1562_v39, %v1558_v46  ;;  %v394_v50 = vpop.xlane.xlu0 %393  ;;  %v665_v44 = vsel %vm271_vm0, %v146_v34, 0.0 }
  0xe1   :  { %v1572_v53 = vrot.slane %v397_v47, %v3223_v7  ;;  %v1567_v54 = vrot.slane %v394_v50, %v3235_v13  ;;  %v177_v50 = vld [vmem:[%s4696_s0 + $0x510] sm:$0xff] }
  0xe3   :  { %v1568_v60 = vsel %vm1395_vm8, %v1567_v54, %v1563_v49  ;;  %714 = vadd.xlane.f32.xlu1 %v713_v51  ;;  %663 = vadd.xlane.f32.xlu0 %v662_v52  ;;  %v163_v51 = vld [vmem:[%s4696_s0 + $0x4a0] sm:$0xff] }
  0xe4   :  { %v403_v62 = vpop.xlane.xlu1 %402  ;;  %v1573_v63 = vsel %vm1402_vm9, %v1572_v53, %v1568_v60  ;;  %v400_v0 = vpop.xlane.xlu0 %399  ;;  %v716_v55 = vsel %vm271_vm0, %v163_v51, 0.0 }
  0xe5   :  { %v1582_v3 = vrot.slane %v403_v62, %v3253_v29  ;;  %v1577_v18 = vrot.slane %v400_v0, %v3256_v33  ;;  %v207_v62 = vld [vmem:[%s4696_s0 + $0x600] sm:$0xff] }
  0xe7   :  { %v1578_v6 = vsel %vm4701_vm10, %v1577_v18, %v1573_v63  ;;  %756 = vadd.xlane.f32.xlu1 %v755_v1  ;;  %753 = vadd.xlane.f32.xlu0 %v752_v2  ;;  %v194_v63 = vld [vmem:[%s4696_s0 + $0x598] sm:$0xff]  ;;  %v848_v18 = vsel %vm271_vm0, %v207_v62, 0.0 }
  0xe8   :  { %v409_v8 = vpop.xlane.xlu1 %408  ;;  %v1583_v9 = vsel %vm1416_vm11, %v1582_v3, %v1578_v6  ;;  %v406_v10 = vpop.xlane.xlu0 %405  ;;  %v809_v4 = vsel %vm271_vm0, %v194_v63, 0.0 }
  0xe9   :  { %v1592_v16 = vrot.slane %v409_v8, %v3263_v42  ;;  %v1587_v17 = vrot.slane %v406_v10, %v3266_v43  ;;  %v225_v8 = vld [vmem:[%s4696_s0 + $0x690] sm:$0xff] }
  0xeb   :  { %v1588_v21 = vsel %vm4700_vm12, %v1587_v17, %v1583_v9  ;;  %897 = vadd.xlane.f32.xlu1 %v896_v12  ;;  %807 = vadd.xlane.f32.xlu0 %v806_v14  ;;  %vm2631_vm12 = vcmask 1041409   ;;  %v208_v9 = vld [vmem:[%s4696_s0 + $0x608] sm:$0xff]  ;;  %v902_v17 = vsel %vm271_vm0, %v225_v8, 0.0 }
  0xec   :  { %v415_v22 = vpop.xlane.xlu1 %414  ;;  %v1593_v23 = vsel %vm1430_vm13, %v1592_v16, %v1588_v21  ;;  %v412_v24 = vpop.xlane.xlu0 %411  ;;  %v851_v19 = vsel %vm271_vm0, %v208_v9, 0.0 }
  0xed   :  { %v1602_v27 = vrot.slane %v415_v22, %v3285_v15  ;;  %v1597_v28 = vrot.slane %v412_v24, %v3288_v61  ;;  %v256_v22 = vld [vmem:[%s4696_s0 + $0x788] sm:$0xff] }
  0xef   :  { %v1598_v37 = vsel %vm1437_vm14, %v1597_v28, %v1593_v23  ;;  %573 = vadd.xlane.f32.xlu1 %v572_v25  ;;  %900 = vadd.xlane.f32.xlu0 %v899_v26  ;;  %v255_v23 = vld [vmem:[%s4696_s0 + $0x780] sm:$0xff]  ;;  %v995_v28 = vsel %vm271_vm0, %v256_v22, 0.0 }
  0xf0   :  { %v1603_v38 = vsel %vm1444_vm15, %v1602_v27, %v1598_v37  ;;  %v421_v39 = vpop.xlane.xlu1 %420  ;;  %v418_v41 = vpop.xlane.xlu0 %417  ;;  %v992_v34 = vsel %vm271_vm0, %v255_v23, 0.0 }
  0xf1   :  { %v3508_v46 = vsel %vm2631_vm12, %v1603_v38, %v3310_v11  ;;  %v1611_v47 = vrot.slane %v421_v39, %v3168_v32  ;;  %v1607_v49 = vrot.slane %v418_v41, %v3162_v30  ;;  %v758_v11 = vsel %vm271_vm0, %v177_v50, 0.0  ;;  %v133_v38 = vld [vmem:[%s4696_s0 + $0x3b0] sm:$0xff]  ;;  %v116_v39 = vld [vmem:[%s4696_s0 + $0x328] sm:$0xff] }
  0xf2   :  { %v575_v50 = vsel %vm271_vm0, %v116_v39, 0.0 }
  0xf3   :  { %v1612_v52 = vsel %vm1346_vm1, %v1611_v47, %v1607_v49  ;;  %666 = vadd.xlane.f32.xlu1 %v665_v44  ;;  %624 = vadd.xlane.f32.xlu0 %v623_v45  ;;  %v626_v49 = vsel %vm271_vm0, %v133_v38, 0.0 }
  0xf4   :  { %v427_v53 = vpop.xlane.xlu1 %426  ;;  %v424_v54 = vpop.xlane.xlu0 %423 }
  0xf5   :  { %v1621_v59 = vrot.slane %v427_v53, %v3165_v31  ;;  %v1616_v60 = vrot.slane %v424_v54, %v3175_v35  ;;  %v164_v53 = vld [vmem:[%s4696_s0 + $0x4a8] sm:$0xff]  ;;  %v147_v54 = vld [vmem:[%s4696_s0 + $0x420] sm:$0xff] }
  0xf6   :  { %v719_v62 = vsel %vm271_vm0, %v164_v53, 0.0  ;;  %v668_v63 = vsel %vm271_vm0, %v147_v54, 0.0 }
  0xf7   :  { %v1617_v0 = vsel %vm1353_vm2, %v1616_v60, %v1612_v52  ;;  %759 = vadd.xlane.f32.xlu1 %v758_v11  ;;  %717 = vadd.xlane.f32.xlu0 %v716_v55 }
  0xf8   :  { %v433_v1 = vpop.xlane.xlu1 %432  ;;  %v1622_v2 = vsel %vm1360_vm3, %v1621_v59, %v1617_v0  ;;  %v430_v3 = vpop.xlane.xlu0 %429 }
  0xf9   :  { %v1631_v5 = vrot.slane %v433_v1, %v3180_v40  ;;  %v1626_v6 = vrot.slane %v430_v3, %v3194_v48  ;;  %v178_v3 = vld [vmem:[%s4696_s0 + $0x518] sm:$0xff] }
  0xfa   :  { %v761_v9 = vsel %vm271_vm0, %v178_v3, 0.0 }
  0xfb   :  { %v1627_v10 = vsel %vm1367_vm4, %v1626_v6, %v1622_v2  ;;  %849 = vadd.xlane.f32.xlu1 %v848_v18  ;;  %810 = vadd.xlane.f32.xlu0 %v809_v4  ;;  %v195_v2 = vld [vmem:[%s4696_s0 + $0x5a0] sm:$0xff] }
  0xfc   :  { %v439_v12 = vpop.xlane.xlu1 %438  ;;  %v1632_v14 = vsel %vm1374_vm5, %v1631_v5, %v1627_v10  ;;  %v436_v16 = vpop.xlane.xlu0 %435  ;;  %v812_v8 = vsel %vm271_vm0, %v195_v2, 0.0 }
  0xfd   :  { %v1641_v20 = vrot.slane %v439_v12, %v3202_v56  ;;  %v1636_v21 = vrot.slane %v436_v16, %v3205_v57  ;;  %v209_v16 = vld [vmem:[%s4696_s0 + $0x610] sm:$0xff] }
  0xfe   :  { %v854_v23 = vsel %vm271_vm0, %v209_v16, 0.0 }
  0xff   :  { %v1637_v24 = vsel %vm1381_vm6, %v1636_v21, %v1632_v14  ;;  %903 = vadd.xlane.f32.xlu1 %v902_v17  ;;  %852 = vadd.xlane.f32.xlu0 %v851_v19  ;;  %v226_v14 = vld [vmem:[%s4696_s0 + $0x698] sm:$0xff] }
 0x100   :  { %v445_v25 = vpop.xlane.xlu1 %444  ;;  %v1642_v26 = vsel %vm1388_vm7, %v1641_v20, %v1637_v24  ;;  %v442_v27 = vpop.xlane.xlu0 %441  ;;  %v905_v22 = vsel %vm271_vm0, %v226_v14, 0.0 }
 0x101   :  { %v1651_v36 = vrot.slane %v445_v25, %v3223_v7  ;;  %v1646_v37 = vrot.slane %v442_v27, %v3235_v13  ;;  %v240_v27 = vld [vmem:[%s4696_s0 + $0x708] sm:$0xff] }
 0x103   :  { %v1647_v41 = vsel %vm1395_vm8, %v1646_v37, %v1642_v26  ;;  %996 = vadd.xlane.f32.xlu1 %v995_v28  ;;  %993 = vadd.xlane.f32.xlu0 %v992_v34  ;;  %v239_v28 = vld [vmem:[%s4696_s0 + $0x700] sm:$0xff] }
 0x104   :  { %v451_v44 = vpop.xlane.xlu1 %450  ;;  %v1652_v45 = vsel %vm1402_vm9, %v1651_v36, %v1647_v41  ;;  %v448_v47 = vpop.xlane.xlu0 %447  ;;  %v944_v38 = vsel %vm271_vm0, %v239_v28, 0.0 }
 0x105   :  { %v1661_v51 = vrot.slane %v451_v44, %v3253_v29  ;;  %v1656_v52 = vrot.slane %v448_v47, %v3256_v33  ;;  %v117_v44 = vld [vmem:[%s4696_s0 + $0x330] sm:$0xff] }
 0x107   :  { %v1657_v11 = vsel %vm4701_vm10, %v1656_v52, %v1652_v45  ;;  %627 = vadd.xlane.f32.xlu1 %v626_v49  ;;  %576 = vadd.xlane.f32.xlu0 %v575_v50  ;;  %vm4702_vm10 = vcmask 851712   ;;  %v257_v45 = vld [vmem:[%s4696_s0 + $0x790] sm:$0xff]  ;;  %v578_v52 = vsel %vm271_vm0, %v117_v44, 0.0 }
 0x108   :  { %v457_v55 = vpop.xlane.xlu1 %456  ;;  %v1662_v59 = vsel %vm1416_vm11, %v1661_v51, %v1657_v11  ;;  %v454_v60 = vpop.xlane.xlu0 %453  ;;  %v998_v53 = vsel %vm271_vm0, %v257_v45, 0.0 }
 0x109   :  { %v1671_v0 = vrot.slane %v457_v55, %v3263_v42  ;;  %v1666_v1 = vrot.slane %v454_v60, %v3266_v43  ;;  %v148_v55 = vld [vmem:[%s4696_s0 + $0x428] sm:$0xff] }
 0x10b   :  { %v1667_v18 = vsel %vm4702_vm10, %v1666_v1, %v1662_v59  ;;  %720 = vadd.xlane.f32.xlu1 %v719_v62  ;;  %669 = vadd.xlane.f32.xlu0 %v668_v63  ;;  %v134_v59 = vld [vmem:[%s4696_s0 + $0x3b8] sm:$0xff]  ;;  %v671_v1 = vsel %vm271_vm0, %v148_v55, 0.0  ;;  %vm4703_vm10 = vcmask 720512  }
 0x10c   :  { %v463_v4 = vpop.xlane.xlu1 %462  ;;  %v1672_v5 = vsel %vm1430_vm13, %v1671_v0, %v1667_v18  ;;  %v460_v6 = vpop.xlane.xlu0 %459  ;;  %v629_v2 = vsel %vm271_vm0, %v134_v59, 0.0 }
 0x10d   :  { %v1681_v10 = vrot.slane %v463_v4, %v3285_v15  ;;  %v1676_v12 = vrot.slane %v460_v6, %v3288_v61  ;;  %v179_v4 = vld [vmem:[%s4696_s0 + $0x520] sm:$0xff] }
 0x10f   :  { %v1677_v17 = vsel %vm1437_vm14, %v1676_v12, %v1672_v5  ;;  %813 = vadd.xlane.f32.xlu1 %v812_v8  ;;  %762 = vadd.xlane.f32.xlu0 %v761_v9  ;;  %v165_v5 = vld [vmem:[%s4696_s0 + $0x4b0] sm:$0xff]  ;;  %v764_v12 = vsel %vm271_vm0, %v179_v4, 0.0 }
 0x110   :  { %v1682_v19 = vsel %vm1444_vm15, %v1681_v10, %v1677_v17  ;;  %v469_v20 = vpop.xlane.xlu1 %468  ;;  %v466_v21 = vpop.xlane.xlu0 %465  ;;  %v722_v14 = vsel %vm271_vm0, %v165_v5, 0.0 }
 0x111   :  { %v3607_v24 = vsel %vm2631_vm12, %v1682_v19, %v3407_v58  ;;  %v1690_v25 = vrot.slane %v469_v20, %v3168_v32  ;;  %v1686_v26 = vrot.slane %v466_v21, %v3162_v30  ;;  %v947_v58 = vsel %vm271_vm0, %v240_v27, 0.0  ;;  %v210_v19 = vld [vmem:[%s4696_s0 + $0x618] sm:$0xff]  ;;  %v196_v20 = vld [vmem:[%s4696_s0 + $0x5a8] sm:$0xff] }
 0x112   :  { %v815_v27 = vsel %vm271_vm0, %v196_v20, 0.0  ;;  %vm4704_vm12 = vcmask 851712  }
 0x113   :  { %v1691_v34 = vsel %vm1346_vm1, %v1690_v25, %v1686_v26  ;;  %906 = vadd.xlane.f32.xlu1 %v905_v22  ;;  %855 = vadd.xlane.f32.xlu0 %v854_v23  ;;  %v857_v26 = vsel %vm271_vm0, %v210_v19, 0.0 }
 0x114   :  { %v475_v36 = vpop.xlane.xlu1 %474  ;;  %v472_v37 = vpop.xlane.xlu0 %471 }
 0x115   :  { %v1700_v39 = vrot.slane %v475_v36, %v3165_v31  ;;  %v1695_v41 = vrot.slane %v472_v37, %v3175_v35  ;;  %v241_v36 = vld [vmem:[%s4696_s0 + $0x710] sm:$0xff]  ;;  %v227_v37 = vld [vmem:[%s4696_s0 + $0x6a0] sm:$0xff] }
 0x116   :  { %v950_v44 = vsel %vm271_vm0, %v241_v36, 0.0  ;;  %v908_v45 = vsel %vm271_vm0, %v227_v37, 0.0 }
 0x117   :  { %v1696_v47 = vsel %vm1353_vm2, %v1695_v41, %v1691_v34  ;;  %948 = vadd.xlane.f32.xlu1 %v947_v58  ;;  %945 = vadd.xlane.f32.xlu0 %v944_v38 }
 0x118   :  { %v481_v49 = vpop.xlane.xlu1 %480  ;;  %v1701_v50 = vsel %vm1360_vm3, %v1700_v39, %v1696_v47  ;;  %v478_v51 = vpop.xlane.xlu0 %477 }
 0x119   :  { %v1710_v54 = vrot.slane %v481_v49, %v3180_v40  ;;  %v1705_v11 = vrot.slane %v478_v51, %v3194_v48  ;;  %v258_v51 = vld [vmem:[%s4696_s0 + $0x798] sm:$0xff] }
 0x11a   :  { %v1001_v59 = vsel %vm271_vm0, %v258_v51, 0.0 }
 0x11b   :  { %v1706_v60 = vsel %vm1367_vm4, %v1705_v11, %v1701_v50  ;;  %579 = vadd.xlane.f32.xlu1 %v578_v52  ;;  %999 = vadd.xlane.f32.xlu0 %v998_v53  ;;  %v118_v50 = vld [vmem:[%s4696_s0 + $0x338] sm:$0xff] }
 0x11c   :  { %v487_v62 = vpop.xlane.xlu1 %486  ;;  %v1711_v63 = vsel %vm1374_vm5, %v1710_v54, %v1706_v60  ;;  %v484_v0 = vpop.xlane.xlu0 %483  ;;  %v581_v55 = vsel %vm271_vm0, %v118_v50, 0.0 }
 0x11d   :  { %v1720_v3 = vrot.slane %v487_v62, %v3202_v56  ;;  %v1715_v18 = vrot.slane %v484_v0, %v3205_v57  ;;  %v135_v0 = vld [vmem:[%s4696_s0 + $0x3c0] sm:$0xff] }
 0x11e   :  { %v632_v5 = vsel %vm271_vm0, %v135_v0, 0.0 }
 0x11f   :  { %v1716_v6 = vsel %vm1381_vm6, %v1715_v18, %v1711_v63  ;;  %672 = vadd.xlane.f32.xlu1 %v671_v1  ;;  %630 = vadd.xlane.f32.xlu0 %v629_v2  ;;  %v149_v63 = vld [vmem:[%s4696_s0 + $0x430] sm:$0xff] }
 0x120   :  { %v493_v8 = vpop.xlane.xlu1 %492  ;;  %v1721_v9 = vsel %vm1388_vm7, %v1720_v3, %v1716_v6  ;;  %v490_v10 = vpop.xlane.xlu0 %489  ;;  %v674_v4 = vsel %vm271_vm0, %v149_v63, 0.0 }
 0x121   :  { %v1730_v16 = vrot.slane %v493_v8, %v3223_v7  ;;  %v1725_v17 = vrot.slane %v490_v10, %v3235_v13  ;;  %v166_v10 = vld [vmem:[%s4696_s0 + $0x4b8] sm:$0xff] }
 0x122   :  { %v725_v20 = vsel %vm271_vm0, %v166_v10, 0.0 }
 0x123   :  { %v1726_v21 = vsel %vm1395_vm8, %v1725_v17, %v1721_v9  ;;  %765 = vadd.xlane.f32.xlu1 %v764_v12  ;;  %723 = vadd.xlane.f32.xlu0 %v722_v14  ;;  %v180_v9 = vld [vmem:[%s4696_s0 + $0x528] sm:$0xff] }
 0x124   :  { %v499_v22 = vpop.xlane.xlu1 %498  ;;  %v1731_v23 = vsel %vm1402_vm9, %v1730_v16, %v1726_v21  ;;  %v496_v25 = vpop.xlane.xlu0 %495  ;;  %v767_v19 = vsel %vm271_vm0, %v180_v9, 0.0 }
 0x125   :  { %v1740_v28 = vrot.slane %v499_v22, %v3253_v29  ;;  %v1735_v34 = vrot.slane %v496_v25, %v3256_v33 }
 0x127   :  { %v1736_v58 = vsel %vm4703_vm10, %v1735_v34, %v1731_v23  ;;  %858 = vadd.xlane.f32.xlu1 %v857_v26  ;;  %816 = vadd.xlane.f32.xlu0 %v815_v27  ;;  %vm2633_vm10 = vcmask 1042434   ;;  %v211_v23 = vld [vmem:[%s4696_s0 + $0x620] sm:$0xff] }
 0x128   :  { %v505_v38 = vpop.xlane.xlu1 %504  ;;  %v1741_v39 = vsel %vm1416_vm11, %v1740_v28, %v1736_v58  ;;  %v502_v41 = vpop.xlane.xlu0 %501  ;;  %v860_v34 = vsel %vm271_vm0, %v211_v23, 0.0 }
 0x129   :  { %v1750_v47 = vrot.slane %v505_v38, %v3263_v42  ;;  %v1745_v49 = vrot.slane %v502_v41, %v3266_v43  ;;  %v242_v38 = vld [vmem:[%s4696_s0 + $0x718] sm:$0xff] }
 0x12b   :  { %v1746_v52 = vsel %vm4704_vm12, %v1745_v49, %v1741_v39  ;;  %951 = vadd.xlane.f32.xlu1 %v950_v44  ;;  %909 = vadd.xlane.f32.xlu0 %v908_v45  ;;  %v228_v39 = vld [vmem:[%s4696_s0 + $0x6a8] sm:$0xff]  ;;  %v953_v49 = vsel %vm271_vm0, %v242_v38, 0.0  ;;  %vm4705_vm12 = vcmask 720512  }
 0x12c   :  { %v511_v53 = vpop.xlane.xlu1 %510  ;;  %v1751_v54 = vsel %vm1430_vm13, %v1750_v47, %v1746_v52  ;;  %v508_v11 = vpop.xlane.xlu0 %507  ;;  %v911_v50 = vsel %vm271_vm0, %v228_v39, 0.0 }
 0x12d   :  { %v1760_v60 = vrot.slane %v511_v53, %v3285_v15  ;;  %v1755_v62 = vrot.slane %v508_v11, %v3288_v61  ;;  %v119_v53 = vld [vmem:[%s4696_s0 + $0x340] sm:$0xff] }
 0x12f   :  { %v1756_v1 = vsel %vm1437_vm14, %v1755_v62, %v1751_v54  ;;  %582 = vadd.xlane.f32.xlu1 %v581_v55  ;;  %1002 = vadd.xlane.f32.xlu0 %v1001_v59  ;;  %v259_v54 = vld [vmem:[%s4696_s0 + $0x7a0] sm:$0xff]  ;;  %v584_v62 = vsel %vm271_vm0, %v119_v53, 0.0 }
 0x130   :  { %v1761_v2 = vsel %vm1444_vm15, %v1760_v60, %v1756_v1  ;;  %v517_v3 = vpop.xlane.xlu1 %516  ;;  %v514_v18 = vpop.xlane.xlu0 %513  ;;  %v1004_v63 = vsel %vm271_vm0, %v259_v54, 0.0 }
 0x131   :  { %v1769_v6 = vrot.slane %v517_v3, %v3168_v32  ;;  %v1765_v8 = vrot.slane %v514_v18, %v3162_v30  ;;  %v3714_v12 = vsel %vm2633_vm10, %v1761_v2, %v3508_v46  ;;  %v197_v46 = vld [vmem:[%s4696_s0 + $0x5b0] sm:$0xff]  ;;  %v150_v2 = vld [vmem:[%s4696_s0 + $0x438] sm:$0xff]  ;;  %v136_v3 = vld [vmem:[%s4696_s0 + $0x3c8] sm:$0xff] }
 0x132   :  { %v818_v36 = vsel %vm271_vm0, %v197_v46, 0.0  ;;  %v635_v9 = vsel %vm271_vm0, %v136_v3, 0.0 }
 0x133   :  { %v1770_v14 = vsel %vm1346_vm1, %v1769_v6, %v1765_v8  ;;  %675 = vadd.xlane.f32.xlu1 %v674_v4  ;;  %633 = vadd.xlane.f32.xlu0 %v632_v5  ;;  %v677_v8 = vsel %vm271_vm0, %v150_v2, 0.0 }
 0x134   :  { %v523_v16 = vpop.xlane.xlu1 %522  ;;  %v520_v17 = vpop.xlane.xlu0 %519 }
 0x135   :  { %v1779_v21 = vrot.slane %v523_v16, %v3165_v31  ;;  %v1774_v22 = vrot.slane %v520_v17, %v3175_v35  ;;  %v181_v16 = vld [vmem:[%s4696_s0 + $0x530] sm:$0xff]  ;;  %v167_v17 = vld [vmem:[%s4696_s0 + $0x4c0] sm:$0xff] }
 0x136   :  { %v770_v23 = vsel %vm271_vm0, %v181_v16, 0.0  ;;  %v728_v46 = vsel %vm271_vm0, %v167_v17, 0.0 }
 0x137   :  { %v1775_v25 = vsel %vm1353_vm2, %v1774_v22, %v1770_v14  ;;  %768 = vadd.xlane.f32.xlu1 %v767_v19  ;;  %726 = vadd.xlane.f32.xlu0 %v725_v20 }
 0x138   :  { %v529_v26 = vpop.xlane.xlu1 %528  ;;  %v1780_v27 = vsel %vm1360_vm3, %v1779_v21, %v1775_v25  ;;  %v526_v28 = vpop.xlane.xlu0 %525 }
 0x139   :  { %v1789_v37 = vrot.slane %v529_v26, %v3180_v40  ;;  %v1784_v58 = vrot.slane %v526_v28, %v3194_v48  ;;  %v198_v28 = vld [vmem:[%s4696_s0 + $0x5b8] sm:$0xff] }
 0x13a   :  { %v821_v39 = vsel %vm271_vm0, %v198_v28, 0.0  ;;  %v213_v28 = vld [vmem:[%s4696_s0 + $0x630] sm:$0xff] }
 0x13b   :  { %v1785_v41 = vsel %vm1367_vm4, %v1784_v58, %v1780_v27  ;;  %861 = vadd.xlane.f32.xlu1 %v860_v34  ;;  %819 = vadd.xlane.f32.xlu0 %v818_v36  ;;  %v212_v27 = vld [vmem:[%s4696_s0 + $0x628] sm:$0xff] }
 0x13c   :  { %v535_v44 = vpop.xlane.xlu1 %534  ;;  %v1790_v45 = vsel %vm1374_vm5, %v1789_v37, %v1785_v41  ;;  %v532_v47 = vpop.xlane.xlu0 %531  ;;  %v863_v38 = vsel %vm271_vm0, %v212_v27, 0.0 }
 0x13d   :  { %v1799_v51 = vrot.slane %v535_v44, %v3202_v56  ;;  %v1794_v52 = vrot.slane %v532_v47, %v3205_v57  ;;  %v229_v47 = vld [vmem:[%s4696_s0 + $0x6b0] sm:$0xff] }
 0x13e   :  { %v914_v54 = vsel %vm271_vm0, %v229_v47, 0.0  ;;  %v244_v47 = vld [vmem:[%s4696_s0 + $0x728] sm:$0xff] }
 0x13f   :  { %v1795_v11 = vsel %vm1381_vm6, %v1794_v52, %v1790_v45  ;;  %954 = vadd.xlane.f32.xlu1 %v953_v49  ;;  %912 = vadd.xlane.f32.xlu0 %v911_v50  ;;  %v243_v45 = vld [vmem:[%s4696_s0 + $0x720] sm:$0xff] }
 0x140   :  { %v541_v55 = vpop.xlane.xlu1 %540  ;;  %v1800_v59 = vsel %vm1388_vm7, %v1799_v51, %v1795_v11  ;;  %v538_v60 = vpop.xlane.xlu0 %537  ;;  %v956_v53 = vsel %vm271_vm0, %v243_v45, 0.0 }
 0x141   :  { %v1809_v0 = vrot.slane %v541_v55, %v3223_v7  ;;  %v1804_v1 = vrot.slane %v538_v60, %v3235_v13  ;;  %v260_v60 = vld [vmem:[%s4696_s0 + $0x7a8] sm:$0xff] }
 0x142   :  { %v1007_v3 = vsel %vm271_vm0, %v260_v60, 0.0  ;;  %v121_v60 = vld [vmem:[%s4696_s0 + $0x350] sm:$0xff] }
 0x143   :  { %v1805_v18 = vsel %vm1395_vm8, %v1804_v1, %v1800_v59  ;;  %585 = vadd.xlane.f32.xlu1 %v584_v62  ;;  %1005 = vadd.xlane.f32.xlu0 %v1004_v63  ;;  %v120_v59 = vld [vmem:[%s4696_s0 + $0x348] sm:$0xff] }
 0x144   :  { %v547_v4 = vpop.xlane.xlu1 %546  ;;  %v1810_v5 = vsel %vm1402_vm9, %v1809_v0, %v1805_v18  ;;  %v544_v6 = vpop.xlane.xlu0 %543  ;;  %v587_v2 = vsel %vm271_vm0, %v120_v59, 0.0 }
 0x145   :  { %v1819_v10 = vrot.slane %v547_v4, %v3253_v29  ;;  %v1814_v14 = vrot.slane %v544_v6, %v3256_v33 }
 0x147   :  { %v1815_v19 = vsel %vm4705_vm12, %v1814_v14, %v1810_v5  ;;  %678 = vadd.xlane.f32.xlu1 %v677_v8  ;;  %636 = vadd.xlane.f32.xlu0 %v635_v9  ;;  %vm4706_vm12 = vcmask 851712   ;;  %v151_v5 = vld [vmem:[%s4696_s0 + $0x440] sm:$0xff] }
 0x148   :  { %v553_v20 = vpop.xlane.xlu1 %552  ;;  %v1820_v21 = vsel %vm1416_vm11, %v1819_v10, %v1815_v19  ;;  %v550_v22 = vpop.xlane.xlu0 %549  ;;  %v680_v10 = vsel %vm271_vm0, %v151_v5, 0.0  ;;  %v152_v5 = vld [vmem:[%s4696_s0 + $0x448] sm:$0xff] }
 0x149   :  { %v1829_v25 = vrot.slane %v553_v20, %v3263_v42  ;;  %v1824_v26 = vrot.slane %v550_v22, %v3266_v43  ;;  %v182_v20 = vld [vmem:[%s4696_s0 + $0x538] sm:$0xff] }
 0x14b   :  { %v1825_v34 = vsel %vm4706_vm12, %v1824_v26, %v1820_v21  ;;  %771 = vadd.xlane.f32.xlu1 %v770_v23  ;;  %729 = vadd.xlane.f32.xlu0 %v728_v46  ;;  %v168_v21 = vld [vmem:[%s4696_s0 + $0x4c8] sm:$0xff] }
 0x14c   :  { %v559_v36 = vpop.xlane.xlu1 %558  ;;  %v1830_v37 = vsel %vm1430_vm13, %v1829_v25, %v1825_v34  ;;  %v556_v58 = vpop.xlane.xlu0 %555  ;;  %v773_v25 = vsel %vm271_vm0, %v182_v20, 0.0  ;;  %v731_v26 = vsel %vm271_vm0, %v168_v21, 0.0  ;;  %v199_v34 = vld [vmem:[%s4696_s0 + $0x5c0] sm:$0xff] }
 0x14d   :  { %v1839_v41 = vrot.slane %v559_v36, %v3285_v15  ;;  %v1834_v44 = vrot.slane %v556_v58, %v3288_v61  ;;  %v183_v21 = vld [vmem:[%s4696_s0 + $0x540] sm:$0xff] }
 0x14f   :  { %v1835_v49 = vsel %vm1437_vm14, %v1834_v44, %v1830_v37  ;;  %864 = vadd.xlane.f32.xlu1 %v863_v38  ;;  %822 = vadd.xlane.f32.xlu0 %v821_v39  ;;  %v866_v38 = vsel %vm271_vm0, %v213_v28, 0.0  ;;  %v824_v39 = vsel %vm271_vm0, %v199_v34, 0.0 }
 0x150   :  { %v1840_v50 = vsel %vm1444_vm15, %v1839_v41, %v1835_v49  ;;  %v565_v51 = vpop.xlane.xlu1 %564  ;;  %v562_v52 = vpop.xlane.xlu0 %561  ;;  %v230_v49 = vld [vmem:[%s4696_s0 + $0x6b8] sm:$0xff] }
 0x151   :  { %v1848_v11 = vrot.slane %v565_v51, %v3168_v32  ;;  %v1844_v55 = vrot.slane %v562_v52, %v3162_v30  ;;  %v3813_v62 = vsel %vm2633_vm10, %v1840_v50, %v3607_v24  ;;  %v137_v24 = vld [vmem:[%s4696_s0 + $0x3d0] sm:$0xff] }
 0x152   :  { %v638_v14 = vsel %vm271_vm0, %v137_v24, 0.0  ;;  %v138_v24 = vld [vmem:[%s4696_s0 + $0x3d8] sm:$0xff] }
 0x153   :  { %v1849_v63 = vsel %vm1346_vm1, %v1848_v11, %v1844_v55  ;;  %957 = vadd.xlane.f32.xlu1 %v956_v53  ;;  %915 = vadd.xlane.f32.xlu0 %v914_v54  ;;  %v959_v54 = vsel %vm271_vm0, %v244_v47, 0.0  ;;  %v917_v11 = vsel %vm271_vm0, %v230_v49, 0.0 }
 0x154   :  { %v571_v0 = vpop.xlane.xlu1 %570  ;;  %v568_v1 = vpop.xlane.xlu0 %567 }
 0x155   :  { %v1858_v18 = vrot.slane %v571_v0, %v3165_v31  ;;  %v1853_v4 = vrot.slane %v568_v1, %v3175_v35 }
 0x157   :  { %v1854_v6 = vsel %vm1353_vm2, %v1853_v4, %v1849_v63  ;;  %588 = vadd.xlane.f32.xlu1 %v587_v2  ;;  %1008 = vadd.xlane.f32.xlu0 %v1007_v3  ;;  %v261_v63 = vld [vmem:[%s4696_s0 + $0x7b0] sm:$0xff]  ;;  %v590_v3 = vsel %vm271_vm0, %v121_v60, 0.0 }
 0x158   :  { %v613_v8 = vpop.xlane.xlu1 %612  ;;  %v610_v9 = vpop.xlane.xlu0 %609  ;;  %v3830_v16 = vsel %vm1360_vm3, %v1858_v18, %v1854_v6  ;;  %v1010_v18 = vsel %vm271_vm0, %v261_v63, 0.0  ;;  %v122_v63 = vld [vmem:[%s4696_s0 + $0x358] sm:$0xff] }
 0x159   :  { %v1927_v17 = vrot.slane %v613_v8, %v3168_v32  ;;  %v1923_v19 = vrot.slane %v610_v9, %v3162_v30 }
 0x15b   :  { %v1928_v22 = vsel %vm1346_vm1, %v1927_v17, %v1923_v19  ;;  %681 = vadd.xlane.f32.xlu1 %v680_v10  ;;  %639 = vadd.xlane.f32.xlu0 %v638_v14  ;;  %v683_v10 = vsel %vm271_vm0, %v152_v5, 0.0  ;;  %v641_v14 = vsel %vm271_vm0, %v138_v24, 0.0 }
 0x15c   :  { %v706_v23 = vpop.xlane.xlu1 %705  ;;  %v616_v46 = vpop.xlane.xlu0 %615 }
 0x15d   :  { %v1932_v27 = vrot.slane %v616_v46, %v3175_v35  ;;  %v2081_v41 = vrot.slane %v706_v23, %v3162_v30 }
 0x15f   :  { %v1933_v36 = vsel %vm1353_vm2, %v1932_v27, %v1928_v22  ;;  %774 = vadd.xlane.f32.xlu1 %v773_v25  ;;  %732 = vadd.xlane.f32.xlu0 %v731_v26  ;;  %v169_v22 = vld [vmem:[%s4696_s0 + $0x4d0] sm:$0xff]  ;;  %v776_v27 = vsel %vm271_vm0, %v183_v21, 0.0 }
 0x160   :  { %v619_v37 = vpop.xlane.xlu1 %618  ;;  %v709_v58 = vpop.xlane.xlu0 %708  ;;  %v734_v28 = vsel %vm271_vm0, %v169_v22, 0.0 }
 0x161   :  { %v1937_v44 = vrot.slane %v619_v37, %v3165_v31  ;;  %v2085_v45 = vrot.slane %v709_v58, %v3168_v32  ;;  %v214_v37 = vld [vmem:[%s4696_s0 + $0x638] sm:$0xff]  ;;  %v200_v58 = vld [vmem:[%s4696_s0 + $0x5c8] sm:$0xff] }
 0x162   :  { %v827_v47 = vsel %vm271_vm0, %v200_v58, 0.0 }
 0x163   :  { %v1938_v50 = vsel %vm1360_vm3, %v1937_v44, %v1933_v36  ;;  %v2086_v51 = vsel %vm1346_vm1, %v2085_v45, %v2081_v41  ;;  %867 = vadd.xlane.f32.xlu1 %v866_v38  ;;  %825 = vadd.xlane.f32.xlu0 %v824_v39  ;;  %v869_v45 = vsel %vm271_vm0, %v214_v37, 0.0 }
 0x164   :  { %v661_v52 = vpop.xlane.xlu1 %660  ;;  %v658_v53 = vpop.xlane.xlu0 %657 }
 0x165   :  { %v2006_v55 = vrot.slane %v661_v52, %v3168_v32  ;;  %v2002_v59 = vrot.slane %v658_v53, %v3162_v30  ;;  %v231_v52 = vld [vmem:[%s4696_s0 + $0x6c0] sm:$0xff] }
 0x167   :  { %v2007_v0 = vsel %vm1346_vm1, %v2006_v55, %v2002_v59  ;;  %960 = vadd.xlane.f32.xlu1 %v959_v54  ;;  %918 = vadd.xlane.f32.xlu0 %v917_v11  ;;  %v920_v59 = vsel %vm271_vm0, %v231_v52, 0.0 }
 0x168   :  { %v802_v1 = vpop.xlane.xlu1 %801  ;;  %v712_v2 = vpop.xlane.xlu0 %711 }
 0x169   :  { %v2090_v4 = vrot.slane %v712_v2, %v3175_v35  ;;  %v2239_v17 = vrot.slane %v802_v1, %v3162_v30 }
 0x16b   :  { %v2091_v6 = vsel %vm1353_vm2, %v2090_v4, %v2086_v51  ;;  %591 = vadd.xlane.f32.xlu1 %v590_v3  ;;  %1011 = vadd.xlane.f32.xlu0 %v1010_v18  ;;  %v245_v51 = vld [vmem:[%s4696_s0 + $0x730] sm:$0xff]  ;;  %v593_v18 = vsel %vm271_vm0, %v122_v63, 0.0 }
 0x16c   :  { %v622_v8 = vpop.xlane.xlu1 %621  ;;  %v805_v9 = vpop.xlane.xlu0 %804  ;;  %v962_v55 = vsel %vm271_vm0, %v245_v51, 0.0 }
 0x16d   :  { %v1942_v19 = vrot.slane %v622_v8, %v3194_v48  ;;  %v2243_v20 = vrot.slane %v805_v9, %v3168_v32  ;;  %v153_v8 = vld [vmem:[%s4696_s0 + $0x450] sm:$0xff]  ;;  %v139_v9 = vld [vmem:[%s4696_s0 + $0x3e0] sm:$0xff] }
 0x16e   :  { %v644_v21 = vsel %vm271_vm0, %v139_v9, 0.0 }
 0x16f   :  { %v1943_v23 = vsel %vm1367_vm4, %v1942_v19, %v1938_v50  ;;  %v2244_v46 = vsel %vm1346_vm1, %v2243_v20, %v2239_v17  ;;  %684 = vadd.xlane.f32.xlu1 %v683_v10  ;;  %642 = vadd.xlane.f32.xlu0 %v641_v14  ;;  %v686_v20 = vsel %vm271_vm0, %v153_v8, 0.0 }
 0x170   :  { %v715_v25 = vpop.xlane.xlu1 %714  ;;  %v664_v26 = vpop.xlane.xlu0 %663 }
 0x171   :  { %v2095_v34 = vrot.slane %v715_v25, %v3165_v31  ;;  %v2011_v36 = vrot.slane %v664_v26, %v3175_v35  ;;  %v184_v25 = vld [vmem:[%s4696_s0 + $0x548] sm:$0xff] }
 0x173   :  { %v2096_v38 = vsel %vm1360_vm3, %v2095_v34, %v2091_v6  ;;  %v2012_v39 = vsel %vm1353_vm2, %v2011_v36, %v2007_v0  ;;  %777 = vadd.xlane.f32.xlu1 %v776_v27  ;;  %735 = vadd.xlane.f32.xlu0 %v734_v28  ;;  %v262_v0 = vld [vmem:[%s4696_s0 + $0x7b8] sm:$0xff]  ;;  %v779_v36 = vsel %vm271_vm0, %v184_v25, 0.0 }
 0x174   :  { %v757_v41 = vpop.xlane.xlu1 %756  ;;  %v754_v44 = vpop.xlane.xlu0 %753  ;;  %v1013_v4 = vsel %vm271_vm0, %v262_v0, 0.0 }
 0x175   :  { %v2164_v49 = vrot.slane %v757_v41, %v3168_v32  ;;  %v2160_v50 = vrot.slane %v754_v44, %v3162_v30  ;;  %v215_v44 = vld [vmem:[%s4696_s0 + $0x640] sm:$0xff] }
 0x177   :  { %v2165_v53 = vsel %vm1346_vm1, %v2164_v49, %v2160_v50  ;;  %870 = vadd.xlane.f32.xlu1 %v869_v45  ;;  %828 = vadd.xlane.f32.xlu0 %v827_v47  ;;  %v872_v50 = vsel %vm271_vm0, %v215_v44, 0.0 }
 0x178   :  { %v898_v54 = vpop.xlane.xlu1 %897  ;;  %v808_v11 = vpop.xlane.xlu0 %807 }
 0x179   :  { %v2248_v60 = vrot.slane %v808_v11, %v3175_v35  ;;  %v2397_v5 = vrot.slane %v898_v54, %v3162_v30  ;;  %v246_v54 = vld [vmem:[%s4696_s0 + $0x738] sm:$0xff] }
 0x17b   :  { %v2249_v1 = vsel %vm1353_vm2, %v2248_v60, %v2244_v46  ;;  %963 = vadd.xlane.f32.xlu1 %v962_v55  ;;  %921 = vadd.xlane.f32.xlu0 %v920_v59  ;;  %v965_v59 = vsel %vm271_vm0, %v246_v54, 0.0 }
 0x17c   :  { %v574_v2 = vpop.xlane.xlu1 %573  ;;  %v901_v3 = vpop.xlane.xlu0 %900 }
 0x17d   :  { %v1863_v24 = vrot.slane %v574_v2, %v3194_v48  ;;  %v2401_v6 = vrot.slane %v901_v3, %v3168_v32  ;;  %v123_v3 = vld [vmem:[%s4696_s0 + $0x360] sm:$0xff] }
 0x17f   :  { %v3944_v10 = vsel %vm1367_vm4, %v1863_v24, %v3830_v16  ;;  %v2402_v14 = vsel %vm1346_vm1, %v2401_v6, %v2397_v5  ;;  %594 = vadd.xlane.f32.xlu1 %v593_v18  ;;  %1014 = vadd.xlane.f32.xlu0 %v1013_v4  ;;  %v170_v16 = vld [vmem:[%s4696_s0 + $0x4d8] sm:$0xff]  ;;  %v596_v6 = vsel %vm271_vm0, %v123_v3, 0.0 }
 0x180   :  { %v667_v17 = vpop.xlane.xlu1 %666  ;;  %v625_v19 = vpop.xlane.xlu0 %624  ;;  %v737_v37 = vsel %vm271_vm0, %v170_v16, 0.0 }
 0x181   :  { %v2016_v22 = vrot.slane %v667_v17, %v3165_v31  ;;  %v1947_v46 = vrot.slane %v625_v19, %v3180_v40  ;;  %v154_v19 = vld [vmem:[%s4696_s0 + $0x458] sm:$0xff] }
 0x183   :  { %v3958_v26 = vsel %vm1360_vm3, %v2016_v22, %v2012_v39  ;;  %v1948_v27 = vsel %vm1374_vm5, %v1947_v46, %v1943_v23  ;;  %687 = vadd.xlane.f32.xlu1 %v686_v20  ;;  %645 = vadd.xlane.f32.xlu0 %v644_v21  ;;  %v201_v23 = vld [vmem:[%s4696_s0 + $0x5d0] sm:$0xff]  ;;  %v689_v46 = vsel %vm271_vm0, %v154_v19, 0.0 }
 0x184   :  { %v760_v28 = vpop.xlane.xlu1 %759  ;;  %v718_v34 = vpop.xlane.xlu0 %717  ;;  %v830_v51 = vsel %vm271_vm0, %v201_v23, 0.0 }
 0x185   :  { %v2169_v58 = vrot.slane %v760_v28, %v3175_v35  ;;  %v2100_v41 = vrot.slane %v718_v34, %v3194_v48  ;;  %v185_v34 = vld [vmem:[%s4696_s0 + $0x550] sm:$0xff] }
 0x186   :  { %v782_v23 = vsel %vm271_vm0, %v185_v34, 0.0 }
 0x187   :  { %v3972_v39 = vsel %vm1353_vm2, %v2169_v58, %v2165_v53  ;;  %v2101_v45 = vsel %vm1367_vm4, %v2100_v41, %v2096_v38  ;;  %780 = vadd.xlane.f32.xlu1 %v779_v36  ;;  %738 = vadd.xlane.f32.xlu0 %v737_v37  ;;  %v232_v53 = vld [vmem:[%s4696_s0 + $0x6c8] sm:$0xff]  ;;  %v171_v36 = vld [vmem:[%s4696_s0 + $0x4e0] sm:$0xff] }
 0x188   :  { %v850_v47 = vpop.xlane.xlu1 %849  ;;  %v811_v49 = vpop.xlane.xlu0 %810  ;;  %v923_v60 = vsel %vm271_vm0, %v232_v53, 0.0 }
 0x189   :  { %v2253_v52 = vrot.slane %v811_v49, %v3165_v31  ;;  %v2318_v63 = vrot.slane %v850_v47, %v3162_v30  ;;  %v740_v47 = vsel %vm271_vm0, %v171_v36, 0.0 }
 0x18b   :  { %v2254_v38 = vsel %vm1360_vm3, %v2253_v52, %v2249_v1  ;;  %873 = vadd.xlane.f32.xlu1 %v872_v50  ;;  %831 = vadd.xlane.f32.xlu0 %v830_v51  ;;  %v263_v1 = vld [vmem:[%s4696_s0 + $0x7c0] sm:$0xff] }
 0x18c   :  { %v904_v11 = vpop.xlane.xlu1 %903  ;;  %v853_v55 = vpop.xlane.xlu0 %852  ;;  %v1016_v8 = vsel %vm271_vm0, %v263_v1, 0.0 }
 0x18d   :  { %v2406_v0 = vrot.slane %v904_v11, %v3175_v35  ;;  %v2322_v2 = vrot.slane %v853_v55, %v3168_v32 }
 0x18f   :  { %v2407_v18 = vsel %vm1353_vm2, %v2406_v0, %v2402_v14  ;;  %v2323_v4 = vsel %vm1346_vm1, %v2322_v2, %v2318_v63  ;;  %966 = vadd.xlane.f32.xlu1 %v965_v59  ;;  %924 = vadd.xlane.f32.xlu0 %v923_v60  ;;  %v140_v14 = vld [vmem:[%s4696_s0 + $0x3e8] sm:$0xff] }
 0x190   :  { %v997_v5 = vpop.xlane.xlu1 %996  ;;  %v994_v24 = vpop.xlane.xlu0 %993  ;;  %v647_v25 = vsel %vm271_vm0, %v140_v14, 0.0 }
 0x191   :  { %v2559_v9 = vrot.slane %v997_v5, %v3168_v32  ;;  %v2555_v17 = vrot.slane %v994_v24, %v3162_v30 }
 0x193   :  { %v4009_v20 = vsel %vm1346_vm1, %v2559_v9, %v2555_v17  ;;  %597 = vadd.xlane.f32.xlu1 %v596_v6  ;;  %1017 = vadd.xlane.f32.xlu0 %v1016_v8 }
 0x194   :  { %v628_v21 = vpop.xlane.xlu1 %627  ;;  %v577_v22 = vpop.xlane.xlu0 %576 }
 0x195   :  { %v1952_v16 = vrot.slane %v628_v21, %v3205_v57  ;;  %v1868_v28 = vrot.slane %v577_v22, %v3180_v40 }
 0x197   :  { %v4022_v37 = vsel %vm1381_vm6, %v1952_v16, %v1948_v27  ;;  %v1869_v58 = vsel %vm1374_vm5, %v1868_v28, %v3944_v10  ;;  %690 = vadd.xlane.f32.xlu1 %v689_v46  ;;  %648 = vadd.xlane.f32.xlu0 %v647_v25  ;;  %v216_v27 = vld [vmem:[%s4696_s0 + $0x648] sm:$0xff]  ;;  %v202_v10 = vld [vmem:[%s4696_s0 + $0x5d8] sm:$0xff]  ;;  %v155_v25 = vld [vmem:[%s4696_s0 + $0x460] sm:$0xff] }
 0x198   :  { %v721_v41 = vpop.xlane.xlu1 %720  ;;  %v670_v44 = vpop.xlane.xlu0 %669  ;;  %v875_v11 = vsel %vm271_vm0, %v216_v27, 0.0  ;;  %v833_v55 = vsel %vm271_vm0, %v202_v10, 0.0  ;;  %v692_v34 = vsel %vm271_vm0, %v155_v25, 0.0 }
 0x199   :  { %v2105_v49 = vrot.slane %v721_v41, %v3180_v40  ;;  %v2021_v50 = vrot.slane %v670_v44, %v3194_v48  ;;  %v186_v41 = vld [vmem:[%s4696_s0 + $0x558] sm:$0xff]  ;;  %v172_v44 = vld [vmem:[%s4696_s0 + $0x4e8] sm:$0xff] }
 0x19a   :  { %v785_v27 = vsel %vm271_vm0, %v186_v41, 0.0  ;;  %v743_v10 = vsel %vm271_vm0, %v172_v44, 0.0 }
 0x19b   :  { %v4037_v51 = vsel %vm1374_vm5, %v2105_v49, %v2101_v45  ;;  %v2022_v52 = vsel %vm1367_vm4, %v2021_v50, %v3958_v26  ;;  %783 = vadd.xlane.f32.xlu1 %v782_v23  ;;  %741 = vadd.xlane.f32.xlu0 %v740_v47  ;;  %v247_v45 = vld [vmem:[%s4696_s0 + $0x740] sm:$0xff]  ;;  %v233_v26 = vld [vmem:[%s4696_s0 + $0x6d0] sm:$0xff] }
 0x19c   :  { %v814_v54 = vpop.xlane.xlu1 %813  ;;  %v763_v53 = vpop.xlane.xlu0 %762  ;;  %v968_v1 = vsel %vm271_vm0, %v247_v45, 0.0  ;;  %v926_v5 = vsel %vm271_vm0, %v233_v26, 0.0 }
 0x19d   :  { %v2258_v59 = vrot.slane %v814_v54, %v3194_v48  ;;  %v2174_v60 = vrot.slane %v763_v53, %v3165_v31 }
 0x19f   :  { %v4052_v63 = vsel %vm1367_vm4, %v2258_v59, %v2254_v38  ;;  %v2175_v0 = vsel %vm1360_vm3, %v2174_v60, %v3972_v39  ;;  %876 = vadd.xlane.f32.xlu1 %v875_v11  ;;  %834 = vadd.xlane.f32.xlu0 %v833_v55  ;;  %v124_v38 = vld [vmem:[%s4696_s0 + $0x368] sm:$0xff]  ;;  %v217_v11 = vld [vmem:[%s4696_s0 + $0x650] sm:$0xff] }
 0x1a0   :  { %v907_v2 = vpop.xlane.xlu1 %906  ;;  %v856_v3 = vpop.xlane.xlu0 %855  ;;  %v264_v39 = vld [vmem:[%s4696_s0 + $0x7c8] sm:$0xff]  ;;  %v599_v14 = vsel %vm271_vm0, %v124_v38, 0.0  ;;  %v878_v45 = vsel %vm271_vm0, %v217_v11, 0.0 }
 0x1a1   :  { %v2411_v24 = vrot.slane %v907_v2, %v3165_v31  ;;  %v2327_v6 = vrot.slane %v856_v3, %v3175_v35  ;;  %v1019_v21 = vsel %vm271_vm0, %v264_v39, 0.0 }
 0x1a3   :  { %v4067_v8 = vsel %vm1360_vm3, %v2411_v24, %v2407_v18  ;;  %v2328_v9 = vsel %vm1353_vm2, %v2327_v6, %v2323_v4  ;;  %969 = vadd.xlane.f32.xlu1 %v968_v1  ;;  %927 = vadd.xlane.f32.xlu0 %v926_v5  ;;  %v141_v18 = vld [vmem:[%s4696_s0 + $0x3f0] sm:$0xff]  ;;  %v248_v1 = vld [vmem:[%s4696_s0 + $0x748] sm:$0xff] }
 0x1a4   :  { %v949_v17 = vpop.xlane.xlu1 %948  ;;  %v946_v19 = vpop.xlane.xlu0 %945  ;;  %v971_v38 = vsel %vm271_vm0, %v248_v1, 0.0 }
 0x1a5   :  { %v2480_v22 = vrot.slane %v949_v17, %v3168_v32  ;;  %v2476_v46 = vrot.slane %v946_v19, %v3162_v30  ;;  %v650_v32 = vsel %vm271_vm0, %v141_v18, 0.0 }
 0x1a7   :  { %v2481_v4 = vsel %vm1346_vm1, %v2480_v22, %v2476_v46  ;;  %600 = vadd.xlane.f32.xlu1 %v599_v14  ;;  %1020 = vadd.xlane.f32.xlu0 %v1019_v21  ;;  %v125_v14 = vld [vmem:[%s4696_s0 + $0x370] sm:$0xff]  ;;  %vm4707_vm1 = vcmask 720512  }
 0x1a8   :  { %v580_v16 = vpop.xlane.xlu1 %579  ;;  %v1000_v28 = vpop.xlane.xlu0 %999  ;;  %v602_v25 = vsel %vm271_vm0, %v125_v14, 0.0 }
 0x1a9   :  { %v1873_v30 = vrot.slane %v580_v16, %v3205_v57  ;;  %v2564_v36 = vrot.slane %v1000_v28, %v3175_v35 }
 0x1ab   :  { %v1874_v23 = vsel %vm1381_vm6, %v1873_v30, %v1869_v58  ;;  %v2565_v47 = vsel %vm1353_vm2, %v2564_v36, %v4009_v20  ;;  %693 = vadd.xlane.f32.xlu1 %v692_v34  ;;  %651 = vadd.xlane.f32.xlu0 %v650_v32  ;;  %v203_v20 = vld [vmem:[%s4696_s0 + $0x5e0] sm:$0xff]  ;;  %v156_v34 = vld [vmem:[%s4696_s0 + $0x468] sm:$0xff] }
 0x1ac   :  { %v673_v49 = vpop.xlane.xlu1 %672  ;;  %v631_v50 = vpop.xlane.xlu0 %630  ;;  %v836_v26 = vsel %vm271_vm0, %v203_v20, 0.0 }
 0x1ad   :  { %v2026_v54 = vrot.slane %v673_v49, %v3180_v40  ;;  %v1957_v53 = vrot.slane %v631_v50, %v3202_v56  ;;  %v187_v50 = vld [vmem:[%s4696_s0 + $0x560] sm:$0xff] }
 0x1af   :  { %v2027_v58 = vsel %vm1374_vm5, %v2026_v54, %v2022_v52  ;;  %v1958_v55 = vsel %vm1388_vm7, %v1957_v53, %v4022_v37  ;;  %786 = vadd.xlane.f32.xlu1 %v785_v27  ;;  %744 = vadd.xlane.f32.xlu0 %v743_v10  ;;  %v234_v37 = vld [vmem:[%s4696_s0 + $0x6d8] sm:$0xff]  ;;  %v788_v53 = vsel %vm271_vm0, %v187_v50, 0.0 }
 0x1b0   :  { %v766_v59 = vpop.xlane.xlu1 %765  ;;  %v724_v60 = vpop.xlane.xlu0 %723  ;;  %v929_v39 = vsel %vm271_vm0, %v234_v37, 0.0 }
 0x1b1   :  { %v2179_v2 = vrot.slane %v766_v59, %v3194_v48  ;;  %v2110_v3 = vrot.slane %v724_v60, %v3205_v57  ;;  %v218_v60 = vld [vmem:[%s4696_s0 + $0x658] sm:$0xff] }
 0x1b3   :  { %v2180_v52 = vsel %vm1367_vm4, %v2179_v2, %v2175_v0  ;;  %v2111_v5 = vsel %vm1381_vm6, %v2110_v3, %v4037_v51  ;;  %879 = vadd.xlane.f32.xlu1 %v878_v45  ;;  %837 = vadd.xlane.f32.xlu0 %v836_v26  ;;  %v265_v51 = vld [vmem:[%s4696_s0 + $0x7d0] sm:$0xff]  ;;  %v881_v3 = vsel %vm271_vm0, %v218_v60, 0.0 }
 0x1b4   :  { %v859_v24 = vpop.xlane.xlu1 %858  ;;  %v817_v6 = vpop.xlane.xlu0 %816  ;;  %v1022_v18 = vsel %vm271_vm0, %v265_v51, 0.0 }
 0x1b5   :  { %v2332_v17 = vrot.slane %v859_v24, %v3165_v31  ;;  %v2263_v19 = vrot.slane %v817_v6, %v3180_v40  ;;  %v249_v6 = vld [vmem:[%s4696_s0 + $0x750] sm:$0xff] }
 0x1b7   :  { %v2333_v0 = vsel %vm1360_vm3, %v2332_v17, %v2328_v9  ;;  %v2264_v21 = vsel %vm1374_vm5, %v2263_v19, %v4052_v63  ;;  %972 = vadd.xlane.f32.xlu1 %v971_v38  ;;  %930 = vadd.xlane.f32.xlu0 %v929_v39  ;;  %v142_v63 = vld [vmem:[%s4696_s0 + $0x3f8] sm:$0xff]  ;;  %v974_v19 = vsel %vm271_vm0, %v249_v6, 0.0 }
 0x1b8   :  { %v952_v22 = vpop.xlane.xlu1 %951  ;;  %v910_v46 = vpop.xlane.xlu0 %909  ;;  %v653_v41 = vsel %vm271_vm0, %v142_v63, 0.0 }
 0x1b9   :  { %v2485_v16 = vrot.slane %v952_v22, %v3175_v35  ;;  %v2416_v28 = vrot.slane %v910_v46, %v3194_v48  ;;  %v695_v35 = vsel %vm271_vm0, %v156_v34, 0.0  ;;  %v126_v46 = vld [vmem:[%s4696_s0 + $0x378] sm:$0xff] }
 0x1bb   :  { %v2486_v9 = vsel %vm1353_vm2, %v2485_v16, %v2481_v4  ;;  %v2417_v32 = vsel %vm1367_vm4, %v2416_v28, %v4067_v8  ;;  %603 = vadd.xlane.f32.xlu1 %v602_v25  ;;  %1023 = vadd.xlane.f32.xlu0 %v1022_v18  ;;  %v173_v8 = vld [vmem:[%s4696_s0 + $0x4f0] sm:$0xff]  ;;  %v605_v28 = vsel %vm271_vm0, %v126_v46, 0.0  ;;  %vm4708_vm2 = vmmov %vm4707_vm1 }
 0x1bc   :  { %v583_v30 = vpop.xlane.xlu1 %582  ;;  %v1003_v36 = vpop.xlane.xlu0 %1002  ;;  %v746_v11 = vsel %vm271_vm0, %v173_v8, 0.0 }
 0x1bd   :  { %v1878_v44 = vrot.slane %v583_v30, %v3202_v56  ;;  %v2569_v49 = vrot.slane %v1003_v36, %v3165_v31  ;;  %v174_v36 = vld [vmem:[%s4696_s0 + $0x4f8] sm:$0xff] }
 0x1bf   :  { %v1879_v4 = vsel %vm1388_vm7, %v1878_v44, %v1874_v23  ;;  %v2570_v27 = vsel %vm1360_vm3, %v2569_v49, %v2565_v47  ;;  %696 = vadd.xlane.f32.xlu1 %v695_v35  ;;  %654 = vadd.xlane.f32.xlu0 %v653_v41  ;;  %v204_v23 = vld [vmem:[%s4696_s0 + $0x5e8] sm:$0xff] }
 0x1c0   :  { %v676_v10 = vpop.xlane.xlu1 %675  ;;  %v634_v54 = vpop.xlane.xlu0 %633  ;;  %v839_v1 = vsel %vm271_vm0, %v204_v23, 0.0 }
 0x1c1   :  { %v2031_v20 = vrot.slane %v676_v10, %v3205_v57  ;;  %v1962_v59 = vrot.slane %v634_v54, %v3235_v13  ;;  %v205_v10 = vld [vmem:[%s4696_s0 + $0x5f0] sm:$0xff] }
 0x1c3   :  { %v2032_v47 = vsel %vm1381_vm6, %v2031_v20, %v2027_v58  ;;  %v1963_v45 = vsel %vm1395_vm8, %v1962_v59, %v1958_v55  ;;  %789 = vadd.xlane.f32.xlu1 %v788_v53  ;;  %747 = vadd.xlane.f32.xlu0 %v746_v11  ;;  %v235_v58 = vld [vmem:[%s4696_s0 + $0x6e0] sm:$0xff]  ;;  %v842_v20 = vsel %vm271_vm0, %v205_v10, 0.0 }
 0x1c4   :  { %v769_v26 = vpop.xlane.xlu1 %768  ;;  %v727_v2 = vpop.xlane.xlu0 %726  ;;  %v932_v14 = vsel %vm271_vm0, %v235_v58, 0.0 }
 0x1c5   :  { %v2184_v37 = vrot.slane %v769_v26, %v3180_v40  ;;  %v2115_v24 = vrot.slane %v727_v2, %v3202_v56  ;;  %v236_v26 = vld [vmem:[%s4696_s0 + $0x6e8] sm:$0xff] }
 0x1c7   :  { %v2185_v55 = vsel %vm1374_vm5, %v2184_v37, %v2180_v52  ;;  %v2116_v38 = vsel %vm1388_vm7, %v2115_v24, %v2111_v5  ;;  %882 = vadd.xlane.f32.xlu1 %v881_v3  ;;  %840 = vadd.xlane.f32.xlu0 %v839_v1  ;;  %v266_v52 = vld [vmem:[%s4696_s0 + $0x7d8] sm:$0xff]  ;;  %v935_v37 = vsel %vm271_vm0, %v236_v26, 0.0 }
 0x1c8   :  { %v862_v39 = vpop.xlane.xlu1 %861  ;;  %v820_v17 = vpop.xlane.xlu0 %819  ;;  %v1025_v34 = vsel %vm271_vm0, %v266_v52, 0.0 }
 0x1c9   :  { %v2337_v51 = vrot.slane %v862_v39, %v3194_v48  ;;  %v2268_v22 = vrot.slane %v820_v17, %v3205_v57  ;;  %v267_v39 = vld [vmem:[%s4696_s0 + $0x7e0] sm:$0xff] }
 0x1cb   :  { %v2338_v5 = vsel %vm1367_vm4, %v2337_v51, %v2333_v0  ;;  %v2269_v25 = vsel %vm1381_vm6, %v2268_v22, %v2264_v21  ;;  %975 = vadd.xlane.f32.xlu1 %v974_v19  ;;  %933 = vadd.xlane.f32.xlu0 %v932_v14  ;;  %v157_v0 = vld [vmem:[%s4696_s0 + $0x470] sm:$0xff]  ;;  %v1028_v51 = vsel %vm271_vm0, %v267_v39, 0.0 }
 0x1cc   :  { %v955_v18 = vpop.xlane.xlu1 %954  ;;  %v913_v16 = vpop.xlane.xlu0 %912  ;;  %v698_v49 = vsel %vm271_vm0, %v157_v0, 0.0 }
 0x1cd   :  { %v2490_v63 = vrot.slane %v955_v18, %v3165_v31  ;;  %v2421_v30 = vrot.slane %v913_v16, %v3180_v40  ;;  %v749_v31 = vsel %vm271_vm0, %v174_v36, 0.0  ;;  %v189_v18 = vld [vmem:[%s4696_s0 + $0x570] sm:$0xff] }
 0x1cf   :  { %v2491_v21 = vsel %vm1360_vm3, %v2490_v63, %v2486_v9  ;;  %v2422_v35 = vsel %vm1374_vm5, %v2421_v30, %v2417_v32  ;;  %606 = vadd.xlane.f32.xlu1 %v605_v28  ;;  %1026 = vadd.xlane.f32.xlu0 %v1025_v34  ;;  %v188_v9 = vld [vmem:[%s4696_s0 + $0x568] sm:$0xff]  ;;  %v794_v63 = vsel %vm271_vm0, %v189_v18, 0.0 }
 0x1d0   :  { %v586_v41 = vpop.xlane.xlu1 %585  ;;  %v1006_v44 = vpop.xlane.xlu0 %1005  ;;  %v791_v59 = vsel %vm271_vm0, %v188_v9, 0.0 }
 0x1d1   :  { %v1883_v50 = vrot.slane %v586_v41, %v3235_v13  ;;  %v2574_v8 = vrot.slane %v1006_v44, %v3194_v48 }
 0x1d3   :  { %v1884_v32 = vsel %vm1395_vm8, %v1883_v50, %v1879_v4  ;;  %v2575_v54 = vsel %vm1367_vm4, %v2574_v8, %v2570_v27  ;;  %750 = vadd.xlane.f32.xlu1 %v749_v31  ;;  %699 = vadd.xlane.f32.xlu0 %v698_v49  ;;  %v219_v4 = vld [vmem:[%s4696_s0 + $0x660] sm:$0xff] }
 0x1d4   :  { %v679_v53 = vpop.xlane.xlu1 %678  ;;  %v637_v11 = vpop.xlane.xlu0 %636  ;;  %v884_v24 = vsel %vm271_vm0, %v219_v4, 0.0 }
 0x1d5   :  { %v2036_v60 = vrot.slane %v679_v53, %v3202_v56  ;;  %v1967_v23 = vrot.slane %v637_v11, %v3223_v7 }
 0x1d7   :  { %v2037_v27 = vsel %vm1388_vm7, %v2036_v60, %v2032_v47  ;;  %v1968_v2 = vsel %vm1402_vm9, %v1967_v23, %v1963_v45  ;;  %843 = vadd.xlane.f32.xlu1 %v842_v20  ;;  %792 = vadd.xlane.f32.xlu0 %v791_v59  ;;  %v250_v47 = vld [vmem:[%s4696_s0 + $0x758] sm:$0xff] }
 0x1d8   :  { %v772_v3 = vpop.xlane.xlu1 %771  ;;  %v730_v1 = vpop.xlane.xlu0 %729  ;;  %v977_v22 = vsel %vm271_vm0, %v250_v47, 0.0 }
 0x1d9   :  { %v2189_v6 = vrot.slane %v772_v3, %v3205_v57  ;;  %v2120_v58 = vrot.slane %v730_v1, %v3235_v13 }
 0x1db   :  { %v2190_v45 = vsel %vm1381_vm6, %v2189_v6, %v2185_v55  ;;  %v2121_v17 = vsel %vm1395_vm8, %v2120_v58, %v2116_v38  ;;  %936 = vadd.xlane.f32.xlu1 %v935_v37  ;;  %885 = vadd.xlane.f32.xlu0 %v884_v24  ;;  %v158_v55 = vld [vmem:[%s4696_s0 + $0x478] sm:$0xff] }
 0x1dc   :  { %v865_v19 = vpop.xlane.xlu1 %864  ;;  %v823_v14 = vpop.xlane.xlu0 %822  ;;  %v701_v30 = vsel %vm271_vm0, %v158_v55, 0.0  ;;  %v1041_v55 = vld [vmem:[%s4697_s1 + $0x8] sm:$0xff] }
 0x1dd   :  { %v2342_v46 = vrot.slane %v865_v19, %v3180_v40  ;;  %v2273_v52 = vrot.slane %v823_v14, %v3202_v56  ;;  %v1056_v14 = vld [vmem:[%s4697_s1 + $0x80] sm:$0xff] }
 0x1df   :  { %v4253_v38 = vsel %vm1374_vm5, %v2342_v46, %v2338_v5  ;;  %v4256_v16 = vsel %vm1388_vm7, %v2273_v52, %v2269_v25  ;;  %1029 = vadd.xlane.f32.xlu1 %v1028_v51  ;;  %978 = vadd.xlane.f32.xlu0 %v977_v22  ;;  %v220_v5 = vld [vmem:[%s4696_s0 + $0x668] sm:$0xff]  ;;  %v206_v25 = vld [vmem:[%s4696_s0 + $0x5f8] sm:$0xff] }
 0x1e0   :  { %v958_v28 = vpop.xlane.xlu1 %957  ;;  %v916_v34 = vpop.xlane.xlu0 %915  ;;  %v887_v49 = vsel %vm271_vm0, %v220_v5, 0.0  ;;  %v845_v50 = vsel %vm271_vm0, %v206_v25, 0.0  ;;  %v1057_v51 = vld [vmem:[%s4697_s1 + $0x88] sm:$0xff]  ;;  %v1058_v25 = vld [vmem:[%s4697_s1 + $0x90] sm:$0xff] }
 0x1e1   :  { %v2495_v36 = vrot.slane %v958_v28, %v3194_v48  ;;  %v2426_v0 = vrot.slane %v916_v34, %v3205_v57  ;;  %v2775_v18 = vpack.c.bf16 %v1057_v51, %v1056_v14 }
 0x1e3   :  { %v4269_v41 = vsel %vm1367_vm4, %v2495_v36, %v2491_v21  ;;  %v4272_v44 = vsel %vm1381_vm6, %v2426_v0, %v2422_v35  ;;  %795 = vadd.xlane.f32.xlu1 %v794_v63  ;;  %702 = vadd.xlane.f32.xlu0 %v701_v30  ;;  %v251_v21 = vld [vmem:[%s4696_s0 + $0x760] sm:$0xff]  ;;  %v237_v35 = vld [vmem:[%s4696_s0 + $0x6f0] sm:$0xff]  ;;  %v252_v30 = vld [vmem:[%s4696_s0 + $0x768] sm:$0xff] }
 0x1e4   :  { %v589_v31 = vpop.xlane.xlu1 %588  ;;  %v1009_v48 = vpop.xlane.xlu0 %1008  ;;  %v980_v59 = vsel %vm271_vm0, %v251_v21, 0.0  ;;  %v938_v60 = vsel %vm271_vm0, %v237_v35, 0.0  ;;  %v269_v63 = vld [vmem:[%s4696_s0 + $0x7f0] sm:$0xff]  ;;  %2776 = vmatprep.subr.bf16.mxu0 %v2775_v18  ;;  %vm4711_vm4 = vmmov %vm4706_vm12 }
 0x1e5   :  { %v1888_v8 = vrot.slane %v589_v31, %v3223_v7  ;;  %v2579_v10 = vrot.slane %v1009_v48, %v3180_v40  ;;  %v1059_v31 = vld [vmem:[%s4697_s1 + $0x98] sm:$0xff]  ;;  %vm4715_vm10 = vmmov %vm4711_vm4 }
 0x1e7   :  { %v4285_v9 = vsel %vm1402_vm9, %v1888_v8, %v1884_v32  ;;  %v4288_v53 = vsel %vm1374_vm5, %v2579_v10, %v2575_v54  ;;  %888 = vadd.xlane.f32.xlu1 %v887_v49  ;;  %846 = vadd.xlane.f32.xlu0 %v845_v50  ;;  %v190_v32 = vld [vmem:[%s4696_s0 + $0x578] sm:$0xff]  ;;  %v268_v54 = vld [vmem:[%s4696_s0 + $0x7e8] sm:$0xff]  ;;  %v1034_v50 = vsel %vm271_vm0, %v269_v63, 0.0  ;;  %v2779_v8 = vpack.c.bf16 %v1059_v31, %v1058_v25  ;;  %v1064_v25 = vld [vmem:[%s4697_s1 + $0xc0] sm:$0xff] }
 0x1e8   :  { %v682_v11 = vpop.xlane.xlu1 %681  ;;  %v640_v20 = vpop.xlane.xlu0 %639  ;;  %v797_v24 = vsel %vm271_vm0, %v190_v32, 0.0  ;;  %v1031_v6 = vsel %vm271_vm0, %v268_v54, 0.0  ;;  %v1043_v10 = vld [vmem:[%s4697_s1 + $0x18] sm:$0xff]  ;;  %v1065_v31 = vld [vmem:[%s4697_s1 + $0xc8] sm:$0xff] }
 0x1e9   :  { %v2041_v23 = vrot.slane %v682_v11, %v3235_v13  ;;  %v1972_v26 = vrot.slane %v640_v20, %v3256_v33  ;;  %v253_v11 = vld [vmem:[%s4696_s0 + $0x770] sm:$0xff]  ;;  %v222_v20 = vld [vmem:[%s4696_s0 + $0x678] sm:$0xff] }
 0x1eb   :  { %v4301_v4 = vsel %vm1395_vm8, %v2041_v23, %v2037_v27  ;;  %v4304_v3 = vsel %vm4707_vm1, %v1972_v26, %v1968_v2  ;;  %981 = vadd.xlane.f32.xlu1 %v980_v59  ;;  %939 = vadd.xlane.f32.xlu0 %v938_v60  ;;  %v238_v27 = vld [vmem:[%s4696_s0 + $0x6f8] sm:$0xff]  ;;  %v221_v2 = vld [vmem:[%s4696_s0 + $0x670] sm:$0xff]  ;;  %v1061_v26 = vld [vmem:[%s4697_s1 + $0xa8] sm:$0xff] }
 0x1ec   :  { %v775_v1 = vpop.xlane.xlu1 %774  ;;  %v733_v37 = vpop.xlane.xlu0 %732  ;;  %v941_v52 = vsel %vm271_vm0, %v238_v27, 0.0  ;;  %v270_v27 = vld [vmem:[%s4696_s0 + $0x7f8] sm:$0xff] }
 0x1ed   :  { %v2194_v58 = vrot.slane %v775_v1, %v3202_v56  ;;  %v2125_v39 = vrot.slane %v733_v37, %v3223_v7  ;;  %v986_v1 = vsel %vm271_vm0, %v253_v11, 0.0  ;;  %v1067_v11 = vld [vmem:[%s4697_s1 + $0xd8] sm:$0xff] }
 0x1ef   :  { %v4317_v47 = vsel %vm1388_vm7, %v2194_v58, %v2190_v45  ;;  %v4320_v19 = vsel %vm1402_vm9, %v2125_v39, %v2121_v17  ;;  %798 = vadd.xlane.f32.xlu1 %v797_v24  ;;  %1032 = vadd.xlane.f32.xlu0 %v1031_v6  ;;  %v890_v45 = vsel %vm271_vm0, %v221_v2, 0.0  ;;  %v1040_v17 = vld [vmem:[%s4697_s1] sm:$0xff]  ;;  %v1045_v24 = vld [vmem:[%s4697_s1 + $0x28] sm:$0xff]  ;;  %v254_v39 = vld [vmem:[%s4696_s0 + $0x778] sm:$0xff] }
 0x1f0   :  { %v868_v22 = vpop.xlane.xlu1 %867  ;;  %v826_v46 = vpop.xlane.xlu0 %825  ;;  %v2777_v36 = vpack.c.bf16 %v1041_v55, %v1040_v17  ;;  %v989_v18 = vsel %vm271_vm0, %v254_v39, 0.0  ;;  %v1047_v55 = vld [vmem:[%s4697_s1 + $0x38] sm:$0xff]  ;;  %v1052_v39 = vld [vmem:[%s4697_s1 + $0x60] sm:$0xff] }
 0x1f1   :  { %v2347_v28 = vrot.slane %v868_v22, %v3205_v57  ;;  %v2278_v34 = vrot.slane %v826_v46, %v3235_v13  ;;  %v1062_v22 = vld [vmem:[%s4697_s1 + $0xb0] sm:$0xff]  ;;  %v1063_v46 = vld [vmem:[%s4697_s1 + $0xb8] sm:$0xff] }
 0x1f2   :  { %2778 = vmatpush3.bf16.msra.mxu0 %v2777_v36  ;;  %v2787_v17 = vpack.c.bf16 %v1063_v46, %v1062_v22 }
 0x1f3   :  { %v4346_v0 = vsel %vm1381_vm6, %v2347_v28, %v4253_v38  ;;  %v4350_v5 = vsel %vm1395_vm8, %v2278_v34, %v4256_v16  ;;  %942 = vadd.xlane.f32.xlu1 %v941_v52  ;;  %891 = vadd.xlane.f32.xlu0 %v890_v45  ;;  %v983_v38 = vsel %vm271_vm0, %v252_v30, 0.0  ;;  %v1042_v16 = vld [vmem:[%s4697_s1 + $0x10] sm:$0xff] }
 0x1f4   :  { %v961_v48 = vpop.xlane.xlu1 %960  ;;  %v919_v49 = vpop.xlane.xlu0 %918  ;;  %v2781_v59 = vpack.c.bf16 %v1043_v10, %v1042_v16  ;;  %2780 = vmatprep.subr.bf16.mxu0 %v2779_v8 }
 0x1f5   :  { %v2500_v21 = vrot.slane %v961_v48, %v3180_v40  ;;  %v2431_v35 = vrot.slane %v919_v49, %v3202_v56  ;;  %v1060_v40 = vld [vmem:[%s4697_s1 + $0xa0] sm:$0xff] }
 0x1f6   :  { %2782 = vmatpush3.bf16.msra.mxu0 %v2781_v59  ;;  %v2783_v37 = vpack.c.bf16 %v1061_v26, %v1060_v40  ;;  %v1050_v26 = vld [vmem:[%s4697_s1 + $0x50] sm:$0xff] }
 0x1f7   :  { %v4376_v60 = vsel %vm1374_vm5, %v2500_v21, %v4269_v41  ;;  %v4380_v23 = vsel %vm1388_vm7, %v2431_v35, %v4272_v44  ;;  %1035 = vadd.xlane.f32.xlu1 %v1034_v50  ;;  %984 = vadd.xlane.f32.xlu0 %v983_v38  ;;  %v893_v41 = vsel %vm271_vm0, %v222_v20, 0.0  ;;  %v1044_v44 = vld [vmem:[%s4697_s1 + $0x20] sm:$0xff]  ;;  %v2791_v50 = vpack.c.bf16 %v1065_v31, %v1064_v25  ;;  %v1066_v35 = vld [vmem:[%s4697_s1 + $0xd0] sm:$0xff] }
 0x1f8   :  { %v592_v32 = vpop.xlane.xlu1 %591  ;;  %v1012_v54 = vpop.xlane.xlu0 %1011  ;;  %v2785_v2 = vpack.c.bf16 %v1045_v24, %v1044_v44  ;;  %2784 = vmatprep.subr.bf16.mxu0 %v2783_v37  ;;  %v2795_v40 = vpack.c.bf16 %v1067_v11, %v1066_v35  ;;  %v1068_v37 = vld [vmem:[%s4697_s1 + $0xe0] sm:$0xff]  ;;  %v1069_v44 = vld [vmem:[%s4697_s1 + $0xe8] sm:$0xff] }
 0x1f9   :  { %v1893_v6 = vrot.slane %v592_v32, %v3256_v33  ;;  %v2584_v58 = vrot.slane %v1012_v54, %v3205_v57 }
 0x1fa   :  { %2786 = vmatpush3.bf16.msra.mxu0 %v2785_v2 }
 0x1fb   :  { %v4406_v14 = vsel %vm4708_vm2, %v1893_v6, %v4285_v9  ;;  %v4410_v51 = vsel %vm1381_vm6, %v2584_v58, %v4288_v53  ;;  %987 = vadd.xlane.f32.xlu1 %v986_v1  ;;  %894 = vadd.xlane.f32.xlu0 %v893_v41  ;;  %v1037_v9 = vsel %vm271_vm0, %v270_v27, 0.0  ;;  %v1046_v53 = vld [vmem:[%s4697_s1 + $0x30] sm:$0xff]  ;;  %vm4709_vm0 = vmmov %vm4707_vm1  ;;  %v2799_v58 = vpack.c.bf16 %v1069_v44, %v1068_v37 }
 0x1fc   :  { %v685_v52 = vpop.xlane.xlu1 %684  ;;  %v643_v45 = vpop.xlane.xlu0 %642  ;;  %v2789_v63 = vpack.c.bf16 %v1047_v55, %v1046_v53  ;;  %2788 = vmatprep.subr.bf16.mxu0 %v2787_v17  ;;  %v1054_v17 = vld [vmem:[%s4697_s1 + $0x70] sm:$0xff]  ;;  %vm4710_vm3 = vmmov %vm4709_vm0 }
 0x1fd   :  { %v2046_v28 = vrot.slane %v685_v52, %v3223_v7  ;;  %v1977_v34 = vrot.slane %v643_v45, %v3253_v29  ;;  %v1070_v52 = vld [vmem:[%s4697_s1 + $0xf0] sm:$0xff]  ;;  %v1071_v45 = vld [vmem:[%s4697_s1 + $0xf8] sm:$0xff]  ;;  %vm4712_vm5 = vmmov %vm4709_vm0 }
 0x1fe   :  { %2790 = vmatpush3.bf16.msra.mxu0 %v2789_v63  ;;  %vm4716_vm12 = vmmov %vm4709_vm0 }
 0x1ff   :  { %v4430_v30 = vsel %vm1402_vm9, %v2046_v28, %v4301_v4  ;;  %v4434_v36 = vsel %vm1416_vm11, %v1977_v34, %v4304_v3  ;;  %990 = vadd.xlane.f32.xlu1 %v989_v18  ;;  %1038 = vadd.xlane.f32.xlu0 %v1037_v9  ;;  %v1048_v4 = vld [vmem:[%s4697_s1 + $0x40] sm:$0xff]  ;;  %v1049_v3 = vld [vmem:[%s4697_s1 + $0x48] sm:$0xff]  ;;  %v2803_v9 = vpack.c.bf16 %v1071_v45, %v1070_v52  ;;  %vm4718_vm1 = vmmov %vm4709_vm0 }
 0x200   :  { %v778_v48 = vpop.xlane.xlu1 %777  ;;  %v736_v49 = vpop.xlane.xlu0 %735  ;;  %v2793_v16 = vpack.c.bf16 %v1049_v3, %v1048_v4  ;;  %2792 = vmatprep.subr.bf16.mxu0 %v2791_v50  ;;  %vm4719_vm2 = vmmov %vm4711_vm4 }
 0x201   :  { %v2199_v38 = vrot.slane %v778_v48, %v3235_v13  ;;  %v2130_v8 = vrot.slane %v736_v49, %v3256_v33 }
 0x202   :  { %2794 = vmatpush3.bf16.msra.mxu0 %v2793_v16 }
 0x203   :  { %v2200_v10 = vsel %vm1395_vm8, %v2199_v38, %v4317_v47  ;;  %v2131_v21 = vsel %vm4709_vm0, %v2130_v8, %v4320_v19  ;;  %v1051_v47 = vld [vmem:[%s4697_s1 + $0x58] sm:$0xff]  ;;  %2796 = vmatprep.subr.bf16.mxu0 %v2795_v40 }
 0x204   :  { %v871_v20 = vpop.xlane.xlu1 %870  ;;  %v829_v59 = vpop.xlane.xlu0 %828  ;;  %v2797_v54 = vpack.c.bf16 %v1051_v47, %v1050_v26 }
 0x205   :  { %v2352_v19 = vrot.slane %v871_v20, %v3202_v56  ;;  %v2283_v32 = vrot.slane %v829_v59, %v3223_v7 }
 0x206   :  { %2798 = vmatpush3.bf16.msra.mxu0 %v2797_v54 }
 0x207   :  { %v2353_v1 = vsel %vm1388_vm7, %v2352_v19, %v4346_v0  ;;  %v2284_v41 = vsel %vm1402_vm9, %v2283_v32, %v4350_v5  ;;  %v1053_v0 = vld [vmem:[%s4697_s1 + $0x68] sm:$0xff]  ;;  %2800 = vmatprep.subr.bf16.mxu0 %v2799_v58 }
 0x208   :  { %v964_v24 = vpop.xlane.xlu1 %963  ;;  %v922_v6 = vpop.xlane.xlu0 %921  ;;  %v2801_v2 = vpack.c.bf16 %v1053_v0, %v1052_v39 }
 0x209   :  { %v2505_v5 = vrot.slane %v964_v24, %v3205_v57  ;;  %v2436_v27 = vrot.slane %v922_v6, %v3235_v13 }
 0x20a   :  { %2802 = vmatpush3.bf16.msra.mxu0 %v2801_v2 }
 0x20b   :  { %v2506_v22 = vsel %vm1381_vm6, %v2505_v5, %v4376_v60  ;;  %v2437_v46 = vsel %vm1395_vm8, %v2436_v27, %v4380_v23  ;;  %v1055_v60 = vld [vmem:[%s4697_s1 + $0x78] sm:$0xff]  ;;  %2804 = vmatprep.subr.bf16.mxu0 %v2803_v9  ;;  %vm4713_vm6 = vmmov %vm4711_vm4 }
 0x20c   :  { %v595_v18 = vpop.xlane.xlu1 %594  ;;  %v1015_v57 = vpop.xlane.xlu0 %1014  ;;  %v2805_v55 = vpack.c.bf16 %v1055_v60, %v1054_v17 }
 0x20d   :  { %v1898_v23 = vrot.slane %v595_v18, %v3253_v29  ;;  %v2589_v53 = vrot.slane %v1015_v57, %v3202_v56 }
 0x20e   :  { %2806 = vmatpush3.bf16.msra.mxu0 %v2805_v55 }
 0x20f   :  { %v1899_v28 = vsel %vm1416_vm11, %v1898_v23, %v4406_v14  ;;  %v2590_v34 = vsel %vm1388_vm7, %v2589_v53, %v4410_v51 }
 0x210   :  { %v688_v63 = vpop.xlane.xlu1 %687  ;;  %v646_v25 = vpop.xlane.xlu0 %645 }
 0x211   :  { %v2051_v31 = vrot.slane %v688_v63, %v3256_v33  ;;  %v1982_v48 = vrot.slane %v646_v25, %v3266_v43 }
 0x213   :  { %v2052_v49 = vsel %vm4710_vm3, %v2051_v31, %v4430_v30  ;;  %v1983_v50 = vsel %vm4711_vm4, %v1982_v48, %v4434_v36  ;;  %vm2639_vm3 = vcmask 1045509  }
 0x214   :  { %v781_v4 = vpop.xlane.xlu1 %780  ;;  %v739_v3 = vpop.xlane.xlu0 %738 }
 0x215   :  { %v2204_v14 = vrot.slane %v781_v4, %v3223_v7  ;;  %v2135_v38 = vrot.slane %v739_v3, %v3253_v29 }
 0x217   :  { %v2205_v51 = vsel %vm1402_vm9, %v2204_v14, %v2200_v10  ;;  %v2136_v8 = vsel %vm1416_vm11, %v2135_v38, %v2131_v21 }
 0x218   :  { %v874_v16 = vpop.xlane.xlu1 %873  ;;  %v832_v35 = vpop.xlane.xlu0 %831 }
 0x219   :  { %v2357_v11 = vrot.slane %v874_v16, %v3235_v13  ;;  %v2288_v20 = vrot.slane %v832_v35, %v3256_v33 }
 0x21b   :  { %v2358_v30 = vsel %vm1395_vm8, %v2357_v11, %v2353_v1  ;;  %v2289_v36 = vsel %vm4712_vm5, %v2288_v20, %v2284_v41  ;;  %vm4721_vm5 = vmmov %vm4719_vm2 }
 0x21c   :  { %v967_v59 = vpop.xlane.xlu1 %966  ;;  %v925_v40 = vpop.xlane.xlu0 %924 }
 0x21d   :  { %v2510_v26 = vrot.slane %v967_v59, %v3202_v56  ;;  %v2441_v47 = vrot.slane %v925_v40, %v3223_v7 }
 0x21f   :  { %v2511_v10 = vsel %vm1388_vm7, %v2510_v26, %v2506_v22  ;;  %v2442_v21 = vsel %vm1402_vm9, %v2441_v47, %v2437_v46  ;;  %vm4714_vm7 = vmmov %vm4709_vm0  ;;  %vm2635_vm0 = vcmask 1043459  }
 0x220   :  { %v598_v19 = vpop.xlane.xlu1 %597  ;;  %v1018_v32 = vpop.xlane.xlu0 %1017 }
 0x221   :  { %v1903_v54 = vrot.slane %v598_v19, %v3266_v43  ;;  %v2594_v37 = vrot.slane %v1018_v32, %v3235_v13 }
 0x223   :  { %v1904_v1 = vsel %vm4713_vm6, %v1903_v54, %v1899_v28  ;;  %v2595_v41 = vsel %vm1395_vm8, %v2594_v37, %v2590_v34  ;;  %vm2641_vm6 = vcmask 1046534  }
 0x224   :  { %v691_v44 = vpop.xlane.xlu1 %690  ;;  %v649_v24 = vpop.xlane.xlu0 %648 }
 0x225   :  { %v2056_v56 = vrot.slane %v691_v44, %v3253_v29  ;;  %v1987_v6 = vrot.slane %v649_v24, %v3263_v42 }
 0x227   :  { %v2057_v58 = vsel %vm1416_vm11, %v2056_v56, %v2052_v49  ;;  %v1988_v39 = vsel %vm1430_vm13, %v1987_v6, %v1983_v50 }
 0x228   :  { %v784_v0 = vpop.xlane.xlu1 %783  ;;  %v742_v5 = vpop.xlane.xlu0 %741 }
 0x229   :  { %v2209_v27 = vrot.slane %v784_v0, %v3256_v33  ;;  %v2140_v2 = vrot.slane %v742_v5, %v3266_v43 }
 0x22b   :  { %v2210_v22 = vsel %vm4714_vm7, %v2209_v27, %v2205_v51  ;;  %v2141_v46 = vsel %vm4715_vm10, %v2140_v2, %v2136_v8  ;;  %vm4722_vm7 = vmmov %vm4718_vm1 }
 0x22c   :  { %v877_v52 = vpop.xlane.xlu1 %876  ;;  %v835_v45 = vpop.xlane.xlu0 %834  ;;  %vm4723_vm10 = vmmov %vm4719_vm2 }
 0x22d   :  { %v2362_v18 = vrot.slane %v877_v52, %v3223_v7  ;;  %v2293_v57 = vrot.slane %v835_v45, %v3253_v29 }
 0x22f   :  { %v2363_v9 = vsel %vm1402_vm9, %v2362_v18, %v2358_v30  ;;  %v2294_v17 = vsel %vm1416_vm11, %v2293_v57, %v2289_v36 }
 0x230   :  { %v970_v60 = vpop.xlane.xlu1 %969  ;;  %v928_v23 = vpop.xlane.xlu0 %927 }
 0x231   :  { %v2515_v53 = vrot.slane %v970_v60, %v3235_v13  ;;  %v2446_v55 = vrot.slane %v928_v23, %v3256_v33 }
 0x233   :  { %v2516_v28 = vsel %vm1395_vm8, %v2515_v53, %v2511_v10  ;;  %v2447_v34 = vsel %vm4716_vm12, %v2446_v55, %v2442_v21  ;;  %vm4717_vm8 = vmmov %vm4711_vm4 }
 0x234   :  { %v601_v63 = vpop.xlane.xlu1 %600  ;;  %v1021_v25 = vpop.xlane.xlu0 %1020  ;;  %vm4720_vm4 = vmmov %vm4719_vm2 }
 0x235   :  { %v1908_v31 = vrot.slane %v601_v63, %v3263_v42  ;;  %v2599_v48 = vrot.slane %v1021_v25, %v3223_v7  ;;  %vm4724_vm12 = vmmov %vm4718_vm1 }
 0x237   :  { %v1909_v49 = vsel %vm1430_vm13, %v1908_v31, %v1904_v1  ;;  %v4550_v50 = vsel %vm1402_vm9, %v2599_v48, %v2595_v41 }
 0x238   :  { %v694_v4 = vpop.xlane.xlu1 %693  ;;  %v652_v3 = vpop.xlane.xlu0 %651 }
 0x239   :  { %v2061_v13 = vrot.slane %v694_v4, %v3266_v43  ;;  %v1992_v14 = vrot.slane %v652_v3, %v3288_v61 }
 0x23b   :  { %v2062_v38 = vsel %vm4717_vm8, %v2061_v13, %v2057_v58  ;;  %v1993_v51 = vsel %vm1437_vm14, %v1992_v14, %v1988_v39  ;;  %vm4725_vm8 = vmmov %vm4719_vm2 }
 0x23c   :  { %v787_v8 = vpop.xlane.xlu1 %786  ;;  %v745_v16 = vpop.xlane.xlu0 %744 }
 0x23d   :  { %v2214_v35 = vrot.slane %v787_v8, %v3253_v29  ;;  %v2145_v11 = vrot.slane %v745_v16, %v3263_v42 }
 0x23f   :  { %v4559_v20 = vsel %vm1416_vm11, %v2214_v35, %v2210_v22  ;;  %v2146_v30 = vsel %vm1430_vm13, %v2145_v11, %v2141_v46 }
 0x240   :  { %v880_v36 = vpop.xlane.xlu1 %879  ;;  %v838_v59 = vpop.xlane.xlu0 %837 }
 0x241   :  { %v2367_v40 = vrot.slane %v880_v36, %v3256_v33  ;;  %v2298_v26 = vrot.slane %v838_v59, %v3266_v43 }
 0x243   :  { %v4565_v47 = vsel %vm4718_vm1, %v2367_v40, %v2363_v9  ;;  %v2299_v10 = vsel %vm4719_vm2, %v2298_v26, %v2294_v17  ;;  %vm4726_vm1 = vmmov %vm4719_vm2  ;;  %vm2643_vm2 = vcmask 1047559  }
 0x244   :  { %v973_v21 = vpop.xlane.xlu1 %972  ;;  %v931_v19 = vpop.xlane.xlu0 %930 }
 0x245   :  { %v2520_v32 = vrot.slane %v973_v21, %v3223_v7  ;;  %v2451_v54 = vrot.slane %v931_v19, %v3253_v29 }
 0x247   :  { %v4571_v37 = vsel %vm1402_vm9, %v2520_v32, %v2516_v28  ;;  %v4574_v1 = vsel %vm1416_vm11, %v2451_v54, %v2447_v34  ;;  %vm2637_vm9 = vcmask 1044484  }
 0x248   :  { %v604_v41 = vpop.xlane.xlu1 %603  ;;  %v4576_v44 = vpop.xlane.xlu0 %1023 }
 0x249   :  { %v1913_v46 = vrot.slane %v604_v41, %v3288_v61 }
 0x24b   :  { %v1914_v57 = vsel %vm1437_vm14, %v1913_v46, %v1909_v49 }
 0x24c   :  { %v697_v24 = vpop.xlane.xlu1 %696  ;;  %v655_v56 = vpop.xlane.xlu0 %654 }
 0x24d   :  { %v1997_v6 = vrot.slane %v655_v56, %v3285_v15 }
 0x24f   :  { %v1998_v58 = vsel %vm1444_vm15, %v1997_v6, %v1993_v51 }
 0x250   :  { %v2647_v7 = vsel %vm2635_vm0, %v1998_v58, %v3813_v62  ;;  %v790_v39 = vpop.xlane.xlu1 %789  ;;  %v748_v0 = vpop.xlane.xlu0 %747 }
 0x251   :  { %v2150_v9 = vrot.slane %v748_v0, %v3288_v61  ;;  %v2219_v32 = vrot.slane %v790_v39, %v3266_v43 }
 0x253   :  { %v2151_v55 = vsel %vm1437_vm14, %v2150_v9, %v2146_v30 }
 0x254   :  { %v4582_v5 = vpop.xlane.xlu1 %882  ;;  %v841_v27 = vpop.xlane.xlu0 %840 }
 0x255   :  { %v2303_v8 = vrot.slane %v841_v27, %v3263_v42 }
 0x257   :  { %v2304_v26 = vsel %vm1430_vm13, %v2303_v8, %v2299_v10  ;;  %v2220_v10 = vsel %vm4720_vm4, %v2219_v32, %v4559_v20 }
 0x258   :  { %v4584_v2 = vpop.xlane.xlu1 %975  ;;  %v934_v22 = vpop.xlane.xlu0 %933 }
 0x259   :  { %v2456_v58 = vrot.slane %v934_v22, %v3266_v43 }
 0x25b   :  { %v2457_v9 = vsel %vm4721_vm5, %v2456_v58, %v4574_v1  ;;  %v2739_v58 = vld [vmem:[%s4698_s2] ss:$0 sm:$0xff] }
 0x25c   :  { %v607_v52 = vpop.xlane.xlu1 %606  ;;  %v4587_v45 = vpop.xlane.xlu0 %1026 }
 0x25d   :  { %v1918_v18 = vrot.slane %v607_v52, %v3285_v15 }
 0x25f   :  { %v1919_v62 = vsel %vm1444_vm15, %v1918_v18, %v1914_v57 }
 0x260   :  { %v2636_v17 = vsel %vm2635_vm0, %v1919_v62, %v3714_v12  ;;  %v751_v60 = vpop.xlane.xlu1 %750  ;;  %v700_v23 = vpop.xlane.xlu0 %699  ;;  %v2066_v12 = vrot.slane %v697_v24, %v3263_v42 }
 0x261   :  { %v2155_v53 = vrot.slane %v751_v60, %v3285_v15  ;;  %v2071_v3 = vrot.slane %v700_v23, %v3288_v61 }
 0x262   :  { %v2067_v51 = vsel %vm1430_vm13, %v2066_v12, %v2062_v38  ;;  %v2525_v12 = vrot.slane %v4584_v2, %v3256_v33 }
 0x263   :  { %v2156_v28 = vsel %vm1444_vm15, %v2155_v53, %v2151_v55  ;;  %v2072_v35 = vsel %vm1437_vm14, %v2071_v3, %v2067_v51  ;;  %v2372_v53 = vrot.slane %v4582_v5, %v3253_v29 }
 0x264   :  { %v844_v34 = vpop.xlane.xlu1 %843  ;;  %v793_v63 = vpop.xlane.xlu0 %792  ;;  %v2648_v25 = vsel %vm2637_vm9, %v2156_v28, %v2647_v7  ;;  %v2604_v28 = vrot.slane %v4576_v44, %v3256_v33 }
 0x265   :  { %v2308_v11 = vrot.slane %v844_v34, %v3288_v61  ;;  %v2224_v56 = vrot.slane %v793_v63, %v3263_v42  ;;  %v2373_v5 = vsel %vm1416_vm11, %v2372_v53, %v4565_v47 }
 0x267   :  { %v2309_v38 = vsel %vm1437_vm14, %v2308_v11, %v2304_v26  ;;  %v2225_v27 = vsel %vm1430_vm13, %v2224_v56, %v2220_v10 }
 0x268   :  { %v937_v31 = vpop.xlane.xlu1 %936  ;;  %v886_v48 = vpop.xlane.xlu0 %885 }
 0x269   :  { %v2461_v46 = vrot.slane %v937_v31, %v3263_v42  ;;  %v2377_v1 = vrot.slane %v886_v48, %v3266_v43  ;;  %v2605_v48 = vsel %vm4722_vm7, %v2604_v28, %v4550_v50  ;;  %v2526_v50 = vsel %vm4724_vm12, %v2525_v12, %v4571_v37 }
 0x26c   :  { %v4599_v49 = vpop.xlane.xlu1 %1029  ;;  %v4601_v4 = vpop.xlane.xlu0 %978 }
 0x26d   :  { %v2530_v44 = vrot.slane %v4601_v4, %v3253_v29  ;;  %v2614_v51 = vrot.slane %v4599_v49, %v3266_v43 }
 0x26f   :  { %v2531_v11 = vsel %vm1416_vm11, %v2530_v44, %v2526_v50 }
 0x270   :  { %v796_v13 = vpop.xlane.xlu1 %795  ;;  %v703_v14 = vpop.xlane.xlu0 %702 }
 0x271   :  { %v2076_v16 = vrot.slane %v703_v14, %v3285_v15  ;;  %v2229_v6 = vrot.slane %v796_v13, %v3288_v61  ;;  %v2609_v13 = vrot.slane %v4587_v45, %v3253_v29  ;;  %v2378_v14 = vsel %vm4723_vm10, %v2377_v1, %v2373_v5 }
 0x273   :  { %v2077_v30 = vsel %vm1444_vm15, %v2076_v16, %v2072_v35  ;;  %v2230_v52 = vsel %vm1437_vm14, %v2229_v6, %v2225_v27 }
 0x274   :  { %v2638_v36 = vsel %vm2637_vm9, %v2077_v30, %v2636_v17  ;;  %v889_v59 = vpop.xlane.xlu1 %888  ;;  %v847_v40 = vpop.xlane.xlu0 %846  ;;  %v2462_v17 = vsel %vm1430_vm13, %v2461_v46, %v2457_v9 }
 0x275   :  { %v2313_v21 = vrot.slane %v847_v40, %v3285_v15  ;;  %v2382_v31 = vrot.slane %v889_v59, %v3263_v42 }
 0x277   :  { %v2314_v19 = vsel %vm1444_vm15, %v2313_v21, %v2309_v38  ;;  %v2383_v47 = vsel %vm1430_vm13, %v2382_v31, %v2378_v14 }
 0x278   :  { %v982_v54 = vpop.xlane.xlu1 %981  ;;  %v940_v41 = vpop.xlane.xlu0 %939  ;;  %v2649_v24 = vsel %vm2639_vm3, %v2314_v19, %v2648_v25 }
 0x279   :  { %v2466_v18 = vrot.slane %v940_v41, %v3288_v61  ;;  %v2535_v33 = vrot.slane %v982_v54, %v3266_v43  ;;  %v2610_v43 = vsel %vm1416_vm11, %v2609_v13, %v2605_v48 }
 0x27b   :  { %v2467_v23 = vsel %vm1437_vm14, %v2466_v18, %v2462_v17 }
 0x27c   :  { %v799_v7 = vpop.xlane.xlu1 %798  ;;  %v1033_v0 = vpop.xlane.xlu0 %1032 }
 0x27d   :  { %v2234_v39 = vrot.slane %v799_v7, %v3285_v15  ;;  %v2619_v16 = vrot.slane %v1033_v0, %v3263_v42 }
 0x27f   :  { %v2235_v57 = vsel %vm1444_vm15, %v2234_v39, %v2230_v52 }
 0x280   :  { %v943_v20 = vpop.xlane.xlu1 %942  ;;  %v892_v62 = vpop.xlane.xlu0 %891  ;;  %v2640_v22 = vsel %vm2639_vm3, %v2235_v57, %v2638_v36  ;;  %v2615_v36 = vsel %vm4725_vm8, %v2614_v51, %v2610_v43 }
 0x281   :  { %v2471_v60 = vrot.slane %v943_v20, %v3285_v15  ;;  %v2387_v3 = vrot.slane %v892_v62, %v3288_v61  ;;  %v2620_v26 = vsel %vm1430_vm13, %v2619_v16, %v2615_v36 }
 0x283   :  { %v2472_v55 = vsel %vm1444_vm15, %v2471_v60, %v2467_v23  ;;  %v2388_v4 = vsel %vm1437_vm14, %v2387_v3, %v2383_v47 }
 0x284   :  { %v1036_v34 = vpop.xlane.xlu1 %1035  ;;  %v985_v63 = vpop.xlane.xlu0 %984  ;;  %v2650_v25 = vsel %vm2641_vm6, %v2472_v55, %v2649_v24 }
 0x285   :  { %v2540_v45 = vrot.slane %v985_v63, %v3263_v42  ;;  %v2624_v35 = vrot.slane %v1036_v34, %v3288_v61  ;;  %v2536_v42 = vsel %vm4726_vm1, %v2535_v33, %v2531_v11 }
 0x287   :  { %v2541_v21 = vsel %vm1430_vm13, %v2540_v45, %v2536_v42  ;;  %v2625_v32 = vsel %vm1437_vm14, %v2624_v35, %v2620_v26 }
 0x288   :  { %v988_v2 = vpop.xlane.xlu1 %987  ;;  %v895_v8 = vpop.xlane.xlu0 %894 }
 0x289   :  { %v2392_v29 = vrot.slane %v895_v8, %v3285_v15  ;;  %v2545_v49 = vrot.slane %v988_v2, %v3288_v61 }
 0x28b   :  { %v2393_v30 = vsel %vm1444_vm15, %v2392_v29, %v2388_v4  ;;  %v2546_v19 = vsel %vm1437_vm14, %v2545_v49, %v2541_v21 }
 0x28c   :  { %v991_v59 = vpop.xlane.xlu1 %990  ;;  %v1039_v40 = vpop.xlane.xlu0 %1038  ;;  %v2642_v37 = vsel %vm2641_vm6, %v2393_v30, %v2640_v22 }
 0x28d   :  { %v2550_v61 = vrot.slane %v991_v59, %v3285_v15  ;;  %v2629_v38 = vrot.slane %v1039_v40, %v3285_v15 }
 0x28f   :  { %v2630_v54 = vsel %vm1444_vm15, %v2629_v38, %v2625_v32  ;;  %v2551_v41 = vsel %vm1444_vm15, %v2550_v61, %v2546_v19 }
 0x290   :  { %v2651_v24 = vsel %vm2643_vm2, %v2630_v54, %v2650_v25  ;;  %v2644_v56 = vsel %vm2643_vm2, %v2551_v41, %v2642_v37 }
 0x291   :  { %2718 = vmatprep.mubr.f32.mxu0 %v2651_v24 }
 0x292   :  { %2719 = vmatmul.mubr.f32.vlgmr.msra.gmra.mrb[0].mxu0 %v2644_v56 }
 0x365   :  { %v2772_v6 = vpop.f32.mrb[0].mxu0 }
 0x366   :  { %v2773_v10 = vpop.f32.mrb[1].mxu0 }
 0x367   :  { %v2774_v15 = vadd.f32 %v2773_v10, %v2772_v6 }
 0x369   :  { %v2721_v7 = vadd.f32 %v2774_v15, %v2739_v58 }
 0x36b   :  { %2724 = vst [vmem:[#allocation2] sm:$0xff] %v2721_v7 }
 0x36c   :  { %2819 = shalt.err (!%p2816_p4)
}
 0x36d   :  { %s2820_s25 = scalar_lea.hbm %s4699_s3, 128 }
 0x36e   :  { %p2821_p5 = scmp.ne.s32.totalorder %s4699_s3, %s2820_s25  ;;  %p2824_p6 = scmp.lt.u32.totalorder %s2820_s25, %s4699_s3 }
 0x370   :  { %p2826_p7 = pnand %p2824_p6, %p2821_p5 }
 0x372   :  { %2829 = shalt.err (!%p2826_p7)
}
 0x373   :  { %2734 = dma.vmem_to_hbm [thread:$0]  %s2732_s21, 128, %s4699_s3, [#allocation3]  }
 0x374   :  { %2830 = dma.done.wait [#allocation3], 128  }
 0x375   :  { %2831 = vsyncadd [#allocation3], 4294967168 }
 0x376   :  { %2738 = vsyncpa [#allocation3], 1 }

</bundles_post_ra>
